<compile_context>
chip_gen: v7x
topology: tpu7x:2x2x1
jax: 0.10.0
libtpu: 0.0.40
codegen_flags: <defaults>
</compile_context>

<pallas_src>
import jax
import jax.numpy as jnp
from jax import lax
from jax.experimental import pallas as pl
from jax.experimental.pallas import tpu as pltpu


def _embed2graph_kernel(lhs_ref, rhs_ref, o_ref):
    """One grid step.

    lhs_ref: (bt, tn, K)  row tile of x for this batch tile
    rhs_ref: (bt, N,  K)  full node slab of x for this batch tile
    o_ref:   (bt, tn, N)  sigmoid(lhs @ rhs^T) per batch element
    """
    nb = o_ref.shape[0]

    def per_batch(i, carry):
        # MXU matmul, contracting the embedding dim of both operands
        # (A @ B^T pattern), f32 accumulation.
        m = lax.dot_general(
            lhs_ref[i], rhs_ref[i],
            dimension_numbers=(((1,), (1,)), ((), ())),
            preferred_element_type=jnp.float32,
        )  # (tn, N) f32
        # sigmoid(x) == 0.5 * tanh(0.5 * x) + 0.5  -> single EUP op, no divide.
        o_ref[i] = (0.5 * jnp.tanh(0.5 * m) + 0.5).astype(o_ref.dtype)
        return carry

    lax.fori_loop(0, nb, per_batch, 0)


def _vmem_capacity_bytes():
    try:
        return int(pltpu.get_tpu_info().vmem_capacity_bytes)
    except Exception:
        return 64 << 20  # conservative default (v7x per-core physical VMEM)


def _plan(B, N, K, itemsize, vmem_limit_bytes=None):
    """Choose (batch tile bt, row tile tn, scoped-VMEM limit)."""
    if vmem_limit_bytes is None:
        # ~70% of physical VMEM for this kernel, rest left for the compiler.
        vmem_limit_bytes = min(int(_vmem_capacity_bytes() * 0.7), 96 << 20)
    # Budget for the objects we size explicitly, with headroom under the limit.
    budget = max(vmem_limit_bytes - (4 << 20), 1 << 20)

    def footprint(bt, tn):
        # Double-buffered pipeline blocks: lhs row tile, rhs full slab, output.
        blocks = 2 * bt * (tn * K + N * K + tn * N) * itemsize
        # Live in-kernel temporaries: f32 dot result + sigmoid value, plus the
        # per-batch-element lhs/rhs slices materialized from the refs.
        temps = 2 * tn * N * 4 + (tn + N) * K * itemsize
        return blocks + temps

    # Row tile: prefer the full node dim (single block, block dims == array
    # dims, so no (8,128) padding and no masking needed).
    tn = N
    if footprint(1, tn) > budget:
        # Closed form of footprint(1, tn) <= budget, solved for tn.
        denom = 3 * K * itemsize + 2 * N * itemsize + 8 * N
        tn_max = max((budget - 3 * N * K * itemsize) // denom, 8)
        if tn_max >= 128:
            tn = (tn_max // 128) * 128
        else:
            tn = (tn_max // 8) * 8
        tn = int(max(8, min(tn, N)))
        # If even tn==8 does not fit (pathological N*K), we still proceed; the
        # compiler will report the VMEM overflow.

    # Batch tile: largest divisor of B whose footprint fits.  Divisor => no
    # batch padding, no ragged batch block, no post-call slice; big blocks
    # amortize the ~0.35us per-grid-step overhead.
    bt = 1
    for d in range(B, 0, -1):
        if B % d == 0 and footprint(d, tn) <= budget:
            bt = d
            break
    return bt, tn, int(vmem_limit_bytes)


def embed2graph_by_product(x, *, vmem_limit_bytes=None):
    """x: (B, N, K) -> (B, N, N), sigmoid(x @ x^T) per batch element."""
    B, N, K = x.shape
    itemsize = jnp.dtype(x.dtype).itemsize
    bt, tn, vmem_limit = _plan(B, N, K, itemsize, vmem_limit_bytes)

    grid = (B // bt, pl.cdiv(N, tn))

    out = pl.pallas_call(
        _embed2graph_kernel,
        out_shape=jax.ShapeDtypeStruct((B, N, N), x.dtype),
        grid_spec=pltpu.PrefetchScalarGridSpec(
            num_scalar_prefetch=0,
            grid=grid,
            in_specs=[
                # LHS row tile: tn is a multiple of 8 or the full node dim; K is
                # the full last dim, so the (8,128) block constraint holds.
                # A ragged last row block (N % tn != 0) is masked by Pallas.
                pl.BlockSpec((bt, tn, K), lambda b, r: (b, r, 0)),
                # RHS full node slab: block index constant along the row axis,
                # so it is DMA'd once per batch tile and reused.
                pl.BlockSpec((bt, N, K), lambda b, r: (b, 0, 0)),
            ],
            # Unpadded output: last dim == full N (exact HBM writeback, no
            # post-call slice), rows tiled by tn.
            out_specs=pl.BlockSpec((bt, tn, N), lambda b, r: (b, r, 0)),
        ),
        compiler_params=pltpu.CompilerParams(
            dimension_semantics=("parallel", "parallel"),
            vmem_limit_bytes=vmem_limit,
        ),
    )(x, x)
    return out


if __name__ == "__main__":
    def ref_fn(v):
        return jax.nn.sigmoid(jnp.einsum("ijk,ipk->ijp", v, v))

    # Case 1: module defaults -- batch=2, roi_num=264, input_dim=32.
    # Exercises the unpadded, lane-unaligned (264) store path, bt=B, grid (1,1).
    x1 = jax.random.normal(jax.random.PRNGKey(0), (2, 264, 32), dtype=jnp.float32)
    o1 = jax.block_until_ready(embed2graph_by_product(x1))
    assert o1.shape == (2, 264, 264)
    assert jnp.allclose(o1, ref_fn(x1), atol=1e-5, rtol=1e-5)

    # Case 2: small, odd batch and small roi count (full-dim blocks, no padding).
    x2 = jax.random.normal(jax.random.PRNGKey(1), (3, 40, 16), dtype=jnp.float32)
    o2 = jax.block_until_ready(embed2graph_by_product(x2))
    assert o2.shape == (3, 40, 40)
    assert jnp.allclose(o2, ref_fn(x2), atol=1e-5, rtol=1e-5)

    # Case 3: force the tiled path (batch-tiled + row-tiled grid) with an
    # artificially small VMEM budget -> bt=2, tn=128, grid=(2, 2).
    x3 = jax.random.normal(jax.random.PRNGKey(2), (4, 256, 32), dtype=jnp.float32)
    o3 = jax.block_until_ready(embed2graph_by_product(x3, vmem_limit_bytes=5 << 20))
    assert o3.shape == (4, 256, 256)
    assert jnp.allclose(o3, ref_fn(x3), atol=1e-5, rtol=1e-5)

    print("KERNEL_OK")
</pallas_src>

<mosaic_0001>
module attributes {stable_mosaic.version = 11 : i64} {
  func.func @_embed2graph_kernel(%arg0: i32, %arg1: i32, %arg2: memref<2x264x32xf32, #tpu.memory_space<vmem>>, %arg3: memref<2x264x32xf32, #tpu.memory_space<vmem>>, %arg4: memref<2x264x264xf32, #tpu.memory_space<vmem>>) attributes {dimension_semantics = [#tpu.dimension_semantics<parallel>, #tpu.dimension_semantics<parallel>], iteration_bounds = array<i64: 1, 1>, scalar_prefetch = 0 : i64, scratch_operands = 0 : i64, tpu.core_type = #tpu.core_type<tc>, window_params = [{transform_indices = @transform_0, window_bounds = array<i64: 2, 264, 32>}, {transform_indices = @transform_1, window_bounds = array<i64: 2, 264, 32>}, {transform_indices = @transform_2, window_bounds = array<i64: 2, 264, 264>}]} {
    %c0_i32 = arith.constant 0 : i32
    %c2_i32 = arith.constant 2 : i32
    %0 = arith.addi %c0_i32, %c2_i32 : i32
    %c1_i32 = arith.constant 1 : i32
    scf.for %arg5 = %c0_i32 to %0 step %c1_i32  : i32 {
      %1 = arith.index_cast %arg5 : i32 to index
      %c0 = arith.constant 0 : index
      %c0_1 = arith.constant 0 : index
      %2 = vector.load %arg2[%1, %c0, %c0_1] : memref<2x264x32xf32, #tpu.memory_space<vmem>>, vector<1x264x32xf32>
      %3 = vector.shape_cast %2 : vector<1x264x32xf32> to vector<264x32xf32>
      %4 = arith.index_cast %arg5 : i32 to index
      %c0_2 = arith.constant 0 : index
      %c0_3 = arith.constant 0 : index
      %5 = vector.load %arg3[%4, %c0_2, %c0_3] : memref<2x264x32xf32, #tpu.memory_space<vmem>>, vector<1x264x32xf32>
      %6 = vector.shape_cast %5 : vector<1x264x32xf32> to vector<264x32xf32>
      %cst = arith.constant dense<0.000000e+00> : vector<264x264xf32>
      %7 = tpu.matmul %3, %6, %cst {dimension_numbers = #tpu.dot_dimension_numbers<[1], [1], [0], [0], [0, 0, 1, 0], [], []>} : vector<264x32xf32>, vector<264x32xf32>, vector<264x264xf32> -> vector<264x264xf32>
      %cst_4 = arith.constant 5.000000e-01 : f32
      %8 = vector.broadcast %cst_4 : f32 to vector<264x264xf32>
      %9 = arith.mulf %8, %7 : vector<264x264xf32>
      %10 = math.tanh %9 : vector<264x264xf32>
      %cst_5 = arith.constant 5.000000e-01 : f32
      %11 = vector.broadcast %cst_5 : f32 to vector<264x264xf32>
      %12 = arith.mulf %11, %10 : vector<264x264xf32>
      %cst_6 = arith.constant 5.000000e-01 : f32
      %13 = vector.broadcast %cst_6 : f32 to vector<264x264xf32>
      %14 = arith.addf %12, %13 : vector<264x264xf32>
      %15 = arith.index_cast %arg5 : i32 to index
      %c0_7 = arith.constant 0 : index
      %c0_8 = arith.constant 0 : index
      %16 = vector.load %arg4[%15, %c0_7, %c0_8] : memref<2x264x264xf32, #tpu.memory_space<vmem>>, vector<1x264x264xf32>
      %17 = vector.shape_cast %16 : vector<1x264x264xf32> to vector<264x264xf32>
      %18 = vector.shape_cast %14 : vector<264x264xf32> to vector<1x264x264xf32>
      tpu.vector_store %arg4[%15, %c0_7, %c0_8], %18 {strides = array<i32>} : memref<2x264x264xf32, #tpu.memory_space<vmem>>, vector<1x264x264xf32>,
    }
    %c2_i32_0 = arith.constant 2 : i32
    return
  }
  func.func @transform_0(%arg0: i32, %arg1: i32) -> (i32, i32, i32) {
    %c0_i32 = arith.constant 0 : i32
    %c0_i32_0 = arith.constant 0 : i32
    return %arg0, %arg1, %c0_i32 : i32, i32, i32
  }
  func.func @transform_1(%arg0: i32, %arg1: i32) -> (i32, i32, i32) {
    %c0_i32 = arith.constant 0 : i32
    %c0_i32_0 = arith.constant 0 : i32
    %c0_i32_1 = arith.constant 0 : i32
    return %arg0, %c0_i32, %c0_i32_0 : i32, i32, i32
  }
  func.func @transform_2(%arg0: i32, %arg1: i32) -> (i32, i32, i32) {
    %c0_i32 = arith.constant 0 : i32
    %c0_i32_0 = arith.constant 0 : i32
    return %arg0, %arg1, %c0_i32 : i32, i32, i32
  }
}

</mosaic_0001>

<bundles_post_ra>
// kernel: tpu_custom_call.1
= control target key start
LH: loop header
LB: loop body
LE: loop exit
PB: predicated region body
PF: predicated region fallthrough
CT: control target
= control target key end

     0   :  { %7 = vsyncpa [#allocation3], 0  ;;  %s1950_s9 = smov 0   ;;  %s2497_s0 = inlined_call_operand.vmem [shape: f32[2,264,32], index: 0, kind: input, shape index: {}]   ;;  %s2498_s1 = inlined_call_operand.vmem [shape: f32[2,264,32], index: 1, kind: input, shape index: {}]   ;;  %s2499_s2 = inlined_call_operand.hbm [shape: f32[2,264,264], index: 2, kind: output, shape index: {}]  }
   0x1 LB: > { %vm87_vm0 = vcmask 261120   ;;  %v1930_v0 = vmov 0.0   ;;  %vm1931_vm1 = vmmov 0   ;;  %s18_s10 = smul.u32 264, %s1928_s9  ;;  %vm1180_vm3 = vcmask 64512   ;;  %s1928_s9 = sphi %s1950_s9, %s17_s9  }
   0x2   : > { %1538 = vmatprep.subr.mxu1 %v1930_v0  ;;  %1540 = vmatprep.mubr.msk.f32.mxu1 %vm1931_vm1, %v1930_v0  ;;  %vm1966_vm2 = vmpackc.low %vm87_vm0, %vm87_vm0  ;;  %s1405_s17 = smul.u32 792, %s1928_s9  ;;  %s17_s9 = sadd.s32 1, %s1928_s9  }
   0x3   : > { %s1962_s13 = scalar_lea.vmem %s2498_s1, %s18_s10  ;;  %s1989_s16 = scalar_lea.vmem %s2497_s0, %s18_s10 }
   0x4   : > { %v70_v2 = vld [vmem:[%s1962_s13 + $0x80] sm:$0xff]  ;;  %v71_v3 = vld [vmem:[%s1962_s13 + $0x88] sm:$0xff]  ;;  %v72_v7 = vld [vmem:[%s1962_s13 + $0x90] sm:$0xff]  ;;  %s2348_s18 = scalar_lea.vmem [#allocation2], %s1405_s17  ;;  %p14_p0 = scmp.ge.s32.totalorder %s17_s9, 2  }
   0x5   : > { %v54_v4 = vld [vmem:[%s1962_s13] sm:$0xff]  ;;  %v1639_v5 = vpack.c.bf16 %v71_v3, %v70_v2  ;;  %v55_v6 = vld [vmem:[%s1962_s13 + $0x8] sm:$0xff]  ;;  %v73_v8 = vld [vmem:[%s1962_s13 + $0x98] sm:$0xff]  ;;  %s1932_s19 = smov (%p14_p0), [#allocation2]  }
   0x6   : > { %v1642_v9 = vpack.c.bf16 %v55_v6, %v54_v4  ;;  %v1645_v10 = vpack.c.bf16 %v73_v8, %v72_v7  ;;  %v56_v11 = vld [vmem:[%s1962_s13 + $0x10] sm:$0xff]  ;;  %v57_v12 = vld [vmem:[%s1962_s13 + $0x18] sm:$0xff]  ;;  %v74_v13 = vld [vmem:[%s1962_s13 + $0xa0] sm:$0xff]  ;;  %s1283_s20 = sshll.u32 (%p14_p0), %s1932_s19, 4  ;;  %s1284_s20 = int_to_ptr.vmem [resolvable:$true] %s1283_s20 }
   0x7   : > { %1641 = vmatprep.subr.msk.bf16.mxu0 %vm1966_vm2, %v1639_v5  ;;  %v75_v14 = vld [vmem:[%s1962_s13 + $0xa8] sm:$0xff]  ;;  %v1648_v15 = vpack.c.bf16 %v57_v12, %v56_v11  ;;  %v86_v17 = vld [vmem:[%s1962_s13 + $0x100] sm:$0xff]  ;;  %v76_v21 = vld [vmem:[%s1962_s13 + $0xb0] sm:$0xff]  ;;  %s1898_s21 = scalar_lea.vmem (%p14_p0), %s1284_s20, 25344  ;;  %p1903_p2 = scmp.lt.s32.totalorder (%p14_p0), %s1284_s20, %s1284_s20 }
   0x8   : > { %1644 = vmatpush3.bf16.xpose.msk.msra.mxu0 %vm1966_vm2, %v1642_v9  ;;  %v1651_v16 = vpack.c.bf16 %v75_v14, %v74_v13  ;;  %1539 = vmatpush3.xpose.msk.msra.mxu1 %vm87_vm0, %v86_v17  ;;  %v1994_v18 = vld [vmem:[%s1989_s16] sm:$0xff]  ;;  %v59_v20 = vld [vmem:[%s1962_s13 + $0x28] sm:$0xff]  ;;  %v77_v22 = vld [vmem:[%s1962_s13 + $0xb8] sm:$0xff]  ;;  %p1899_p1 = scmp.ne.s32.totalorder (%p14_p0), %s1284_s20, %s1898_s21  ;;  %p1904_p3 = scmp.lt.s32.totalorder (%p14_p0), %s1898_s21, %s1898_s21 }
   0x9   : > { %1647 = vmatprep.subr.msk.bf16.mxu0 %vm1966_vm2, %v1645_v10  ;;  %1438 = vmatprep.mubr.msk.f32.mxu0 %vm87_vm0, %v1994_v18  ;;  %v58_v19 = vld [vmem:[%s1962_s13 + $0x20] sm:$0xff]  ;;  %v2009_v23 = vld [vmem:[%s1989_s16 + $0x8] sm:$0xff]  ;;  %v1657_v25 = vpack.c.bf16 %v77_v22, %v76_v21  ;;  %v2016_v26 = vld [vmem:[%s1989_s16 + $0x10] sm:$0xff] }
   0xa   : > { %v1654_v24 = vpack.c.bf16 %v59_v20, %v58_v19  ;;  %v60_v27 = vld [vmem:[%s1962_s13 + $0x30] sm:$0xff]  ;;  %v61_v28 = vld [vmem:[%s1962_s13 + $0x38] sm:$0xff]  ;;  %v78_v29 = vld [vmem:[%s1962_s13 + $0xc0] sm:$0xff]  ;;  %p1905_p4 = por (%p14_p0), %p1904_p3, %p1903_p2 }
   0xb   : > { %1541 = vmatmul.mubr.msk.f32.vlgmr.msra.gmra.mrb[0].mxu1 %vm87_vm0, %v1994_v18  ;;  %v79_v30 = vld [vmem:[%s1962_s13 + $0xc8] sm:$0xff]  ;;  %v2031_v31 = vld [vmem:[%s1989_s16 + $0x18] sm:$0xff]  ;;  %v1660_v32 = vpack.c.bf16 %v61_v28, %v60_v27  ;;  %v2038_v34 = vld [vmem:[%s1989_s16 + $0x20] sm:$0xff] }
   0xc   : > { %1543 = vmatprep.mubr.msk.f32.mxu1 %vm1931_vm1, %v1930_v0  ;;  %v1663_v33 = vpack.c.bf16 %v79_v30, %v78_v29  ;;  %v62_v35 = vld [vmem:[%s1962_s13 + $0x40] sm:$0xff]  ;;  %v63_v36 = vld [vmem:[%s1962_s13 + $0x48] sm:$0xff]  ;;  %v80_v37 = vld [vmem:[%s1962_s13 + $0xd0] sm:$0xff]  ;;  %p1906_p5 = pnand (%p14_p0), %p1905_p4, %p1899_p1 }
   0xd   : > { %v81_v38 = vld [vmem:[%s1962_s13 + $0xd8] sm:$0xff]  ;;  %v2053_v39 = vld [vmem:[%s1989_s16 + $0x28] sm:$0xff]  ;;  %v1666_v40 = vpack.c.bf16 %v63_v36, %v62_v35  ;;  %v2060_v42 = vld [vmem:[%s1989_s16 + $0x30] sm:$0xff] }
   0xe   : > { %v1669_v41 = vpack.c.bf16 %v81_v38, %v80_v37  ;;  %v64_v43 = vld [vmem:[%s1962_s13 + $0x50] sm:$0xff]  ;;  %v65_v44 = vld [vmem:[%s1962_s13 + $0x58] sm:$0xff]  ;;  %v82_v45 = vld [vmem:[%s1962_s13 + $0xe0] sm:$0xff] }
   0xf   : > { %1544 = vmatmul.mubr.msk.f32.gmra.mrb[2].mxu1 %vm87_vm0, %v2009_v23  ;;  %v83_v46 = vld [vmem:[%s1962_s13 + $0xe8] sm:$0xff]  ;;  %v2075_v47 = vld [vmem:[%s1989_s16 + $0x38] sm:$0xff]  ;;  %v1672_v48 = vpack.c.bf16 %v65_v44, %v64_v43  ;;  %v2082_v50 = vld [vmem:[%s1989_s16 + $0x40] sm:$0xff] }
  0x10   : > { %1650 = vmatpush3.bf16.xpose.msk.msra.mxu0 %vm1966_vm2, %v1648_v15  ;;  %1546 = vmatprep.mubr.msk.f32.mxu1 %vm1931_vm1, %v1930_v0  ;;  %v1675_v49 = vpack.c.bf16 %v83_v46, %v82_v45  ;;  %v66_v51 = vld [vmem:[%s1962_s13 + $0x60] sm:$0xff]  ;;  %v67_v52 = vld [vmem:[%s1962_s13 + $0x68] sm:$0xff]  ;;  %v84_v53 = vld [vmem:[%s1962_s13 + $0xf0] sm:$0xff] }
  0x11   : > { %1653 = vmatprep.subr.msk.bf16.mxu0 %vm1966_vm2, %v1651_v16  ;;  %v85_v54 = vld [vmem:[%s1962_s13 + $0xf8] sm:$0xff]  ;;  %v2097_v55 = vld [vmem:[%s1989_s16 + $0x48] sm:$0xff]  ;;  %v1678_v56 = vpack.c.bf16 %v67_v52, %v66_v51  ;;  %v2104_v58 = vld [vmem:[%s1989_s16 + $0x50] sm:$0xff] }
  0x12   : > { %v1681_v57 = vpack.c.bf16 %v85_v54, %v84_v53  ;;  %v68_v59 = vld [vmem:[%s1962_s13 + $0x70] sm:$0xff]  ;;  %v69_v60 = vld [vmem:[%s1962_s13 + $0x78] sm:$0xff]  ;;  %v2124_v63 = vld [vmem:[%s1989_s16 + $0x60] sm:$0xff] }
  0x13   : > { %1547 = vmatmul.mubr.msk.f32.gmra.mrb[4].mxu1 %vm87_vm0, %v2016_v26  ;;  %v2117_v61 = vld [vmem:[%s1989_s16 + $0x58] sm:$0xff]  ;;  %v1684_v62 = vpack.c.bf16 %v69_v60, %v68_v59  ;;  %v2133_v2 = vld [vmem:[%s1989_s16 + $0x68] sm:$0xff]  ;;  %v2142_v3 = vld [vmem:[%s1989_s16 + $0x70] sm:$0xff] }
  0x14   : > { %1549 = vmatprep.mubr.msk.f32.mxu1 %vm1931_vm1, %v1930_v0  ;;  %v2153_v1 = vld [vmem:[%s1989_s16 + $0x78] sm:$0xff]  ;;  %v2164_v4 = vld [vmem:[%s1989_s16 + $0x80] sm:$0xff]  ;;  %v2175_v5 = vld [vmem:[%s1989_s16 + $0x88] sm:$0xff] }
  0x15   : > { %v2186_v6 = vld [vmem:[%s1989_s16 + $0x90] sm:$0xff]  ;;  %v2197_v7 = vld [vmem:[%s1989_s16 + $0x98] sm:$0xff]  ;;  %v2208_v8 = vld [vmem:[%s1989_s16 + $0xa0] sm:$0xff] }
  0x16   : > { %v2219_v9 = vld [vmem:[%s1989_s16 + $0xa8] sm:$0xff]  ;;  %v42_v10 = vld [vmem:[%s1989_s16 + $0xb0] sm:$0xff]  ;;  %v43_v11 = vld [vmem:[%s1989_s16 + $0xb8] sm:$0xff] }
  0x17   : > { %1550 = vmatmul.mubr.msk.f32.gmra.mrb[6].mxu1 %vm87_vm0, %v2031_v31  ;;  %v44_v12 = vld [vmem:[%s1989_s16 + $0xc0] sm:$0xff]  ;;  %v45_v13 = vld [vmem:[%s1989_s16 + $0xc8] sm:$0xff]  ;;  %v46_v14 = vld [vmem:[%s1989_s16 + $0xd0] sm:$0xff] }
  0x18   : > { %1656 = vmatpush3.bf16.xpose.msk.msra.mxu0 %vm1966_vm2, %v1654_v24  ;;  %1552 = vmatprep.mubr.msk.f32.mxu1 %vm1931_vm1, %v1930_v0  ;;  %v47_v15 = vld [vmem:[%s1989_s16 + $0xd8] sm:$0xff]  ;;  %v48_v16 = vld [vmem:[%s1989_s16 + $0xe0] sm:$0xff]  ;;  %v49_v17 = vld [vmem:[%s1989_s16 + $0xe8] sm:$0xff] }
  0x19   : > { %1659 = vmatprep.subr.msk.bf16.mxu0 %vm1966_vm2, %v1657_v25  ;;  %v51_v19 = vld [vmem:[%s1989_s16 + $0xf8] sm:$0xff]  ;;  %v52_v20 = vld [vmem:[%s1989_s16 + $0x100] sm:$0xff] }
  0x1b   : > { %1553 = vmatmul.mubr.msk.f32.gmra.mrb[8].mxu1 %vm87_vm0, %v2038_v34 }
  0x1c   : > { %1555 = vmatprep.mubr.msk.f32.mxu1 %vm1931_vm1, %v1930_v0 }
  0x1f   : > { %1556 = vmatmul.mubr.msk.f32.gmra.mrb[10].mxu1 %vm87_vm0, %v2053_v39 }
  0x20   : > { %1662 = vmatpush3.bf16.xpose.msk.msra.mxu0 %vm1966_vm2, %v1660_v32  ;;  %1558 = vmatprep.mubr.msk.f32.mxu1 %vm1931_vm1, %v1930_v0 }
  0x21   : > { %1665 = vmatprep.subr.msk.bf16.mxu0 %vm1966_vm2, %v1663_v33 }
  0x23   : > { %1559 = vmatmul.mubr.msk.f32.gmra.mrb[12].mxu1 %vm87_vm0, %v2060_v42 }
  0x24   : > { %1561 = vmatprep.mubr.msk.f32.mxu1 %vm1931_vm1, %v1930_v0 }
  0x27   : > { %1562 = vmatmul.mubr.msk.f32.gmra.mrb[14].mxu1 %vm87_vm0, %v2075_v47 }
  0x28   : > { %1668 = vmatpush3.bf16.xpose.msk.msra.mxu0 %vm1966_vm2, %v1666_v40  ;;  %1564 = vmatprep.mubr.msk.f32.mxu1 %vm1931_vm1, %v1930_v0 }
  0x29   : > { %1671 = vmatprep.subr.msk.bf16.mxu0 %vm1966_vm2, %v1669_v41 }
  0x2b   : > { %1565 = vmatmul.mubr.msk.f32.gmra.mrb[16].mxu1 %vm87_vm0, %v2082_v50 }
  0x2c   : > { %1567 = vmatprep.mubr.msk.f32.mxu1 %vm1931_vm1, %v1930_v0 }
  0x2f   : > { %1568 = vmatmul.mubr.msk.f32.gmra.mrb[18].mxu1 %vm87_vm0, %v2097_v55 }
  0x30   : > { %1674 = vmatpush3.bf16.xpose.msk.msra.mxu0 %vm1966_vm2, %v1672_v48  ;;  %1570 = vmatprep.mubr.msk.f32.mxu1 %vm1931_vm1, %v1930_v0 }
  0x31   : > { %1677 = vmatprep.subr.msk.bf16.mxu0 %vm1966_vm2, %v1675_v49 }
  0x33   : > { %1571 = vmatmul.mubr.msk.f32.gmra.mrb[20].mxu1 %vm87_vm0, %v2104_v58 }
  0x34   : > { %1573 = vmatprep.mubr.msk.f32.mxu1 %vm1931_vm1, %v1930_v0 }
  0x37   : > { %1574 = vmatmul.mubr.msk.f32.gmra.mrb[22].mxu1 %vm87_vm0, %v2117_v61 }
  0x38   : > { %1680 = vmatpush3.bf16.xpose.msk.msra.mxu0 %vm1966_vm2, %v1678_v56  ;;  %1576 = vmatprep.mubr.msk.f32.mxu1 %vm1931_vm1, %v1930_v0 }
  0x39   : > { %1683 = vmatprep.subr.msk.bf16.mxu0 %vm1966_vm2, %v1681_v57 }
  0x3b   : > { %1577 = vmatmul.mubr.msk.f32.gmra.mrb[24].mxu1 %vm87_vm0, %v2124_v63 }
  0x3c   : > { %1579 = vmatprep.mubr.msk.f32.mxu1 %vm1931_vm1, %v1930_v0 }
  0x3f   : > { %1580 = vmatmul.mubr.msk.f32.gmra.mrb[26].mxu1 %vm87_vm0, %v2133_v2 }
  0x40   : > { %1686 = vmatpush3.bf16.xpose.msk.msra.mxu0 %vm1966_vm2, %v1684_v62  ;;  %1582 = vmatprep.mubr.msk.f32.mxu1 %vm1931_vm1, %v1930_v0 }
  0x43   : > { %1583 = vmatmul.mubr.msk.f32.gmra.mrb[28].mxu1 %vm87_vm0, %v2142_v3 }
  0x44   : > { %1585 = vmatprep.mubr.msk.f32.mxu1 %vm1931_vm1, %v1930_v0 }
  0x47   : > { %1439 = vmatmul.mubr.msk.f32.vlgmr.msra.gmra.mrb[0].mxu0 %vm87_vm0, %v1994_v18  ;;  %1586 = vmatmul.mubr.msk.f32.gmra.mrb[30].mxu1 %vm87_vm0, %v2153_v1  ;;  %v50_v18 = vld [vmem:[%s1989_s16 + $0xf0] sm:$0xff] }
  0x48   : > { %1440 = vmatprep.mubr.msk.f32.mxu0 %vm87_vm0, %v2009_v23  ;;  %1588 = vmatprep.mubr.msk.f32.mxu1 %vm1931_vm1, %v1930_v0 }
  0x4b   : > { %1441 = vmatmul.mubr.msk.f32.gmra.mrb[2].mxu0 %vm87_vm0, %v2009_v23  ;;  %1589 = vmatmul.mubr.msk.f32.gmra.mrb[32].mxu1 %vm87_vm0, %v2164_v4 }
  0x4c   : > { %1442 = vmatprep.mubr.msk.f32.mxu0 %vm87_vm0, %v2016_v26  ;;  %1591 = vmatprep.mubr.msk.f32.mxu1 %vm1931_vm1, %v1930_v0 }
  0x4f   : > { %1443 = vmatmul.mubr.msk.f32.gmra.mrb[4].mxu0 %vm87_vm0, %v2016_v26  ;;  %1592 = vmatmul.mubr.msk.f32.gmra.mrb[34].mxu1 %vm87_vm0, %v2175_v5 }
  0x50   : > { %1444 = vmatprep.mubr.msk.f32.mxu0 %vm87_vm0, %v2031_v31  ;;  %1594 = vmatprep.mubr.msk.f32.mxu1 %vm1931_vm1, %v1930_v0 }
  0x53   : > { %1445 = vmatmul.mubr.msk.f32.gmra.mrb[6].mxu0 %vm87_vm0, %v2031_v31  ;;  %1595 = vmatmul.mubr.msk.f32.gmra.mrb[36].mxu1 %vm87_vm0, %v2186_v6 }
  0x54   : > { %1446 = vmatprep.mubr.msk.f32.mxu0 %vm87_vm0, %v2038_v34  ;;  %1597 = vmatprep.mubr.msk.f32.mxu1 %vm1931_vm1, %v1930_v0 }
  0x57   : > { %1447 = vmatmul.mubr.msk.f32.gmra.mrb[8].mxu0 %vm87_vm0, %v2038_v34  ;;  %1598 = vmatmul.mubr.msk.f32.gmra.mrb[38].mxu1 %vm87_vm0, %v2197_v7 }
  0x58   : > { %1448 = vmatprep.mubr.msk.f32.mxu0 %vm87_vm0, %v2053_v39  ;;  %1600 = vmatprep.mubr.msk.f32.mxu1 %vm1931_vm1, %v1930_v0 }
  0x5b   : > { %1449 = vmatmul.mubr.msk.f32.gmra.mrb[10].mxu0 %vm87_vm0, %v2053_v39  ;;  %1601 = vmatmul.mubr.msk.f32.gmra.mrb[40].mxu1 %vm87_vm0, %v2208_v8 }
  0x5c   : > { %1450 = vmatprep.mubr.msk.f32.mxu0 %vm87_vm0, %v2060_v42  ;;  %1603 = vmatprep.mubr.msk.f32.mxu1 %vm1931_vm1, %v1930_v0 }
  0x5f   : > { %1451 = vmatmul.mubr.msk.f32.gmra.mrb[12].mxu0 %vm87_vm0, %v2060_v42  ;;  %1604 = vmatmul.mubr.msk.f32.gmra.mrb[42].mxu1 %vm87_vm0, %v2219_v9 }
  0x60   : > { %1452 = vmatprep.mubr.msk.f32.mxu0 %vm87_vm0, %v2075_v47  ;;  %1606 = vmatprep.mubr.msk.f32.mxu1 %vm1931_vm1, %v1930_v0 }
  0x63   : > { %1453 = vmatmul.mubr.msk.f32.gmra.mrb[14].mxu0 %vm87_vm0, %v2075_v47  ;;  %1607 = vmatmul.mubr.msk.f32.gmra.mrb[44].mxu1 %vm87_vm0, %v42_v10 }
  0x64   : > { %1454 = vmatprep.mubr.msk.f32.mxu0 %vm87_vm0, %v2082_v50  ;;  %1609 = vmatprep.mubr.msk.f32.mxu1 %vm1931_vm1, %v1930_v0 }
  0x67   : > { %1455 = vmatmul.mubr.msk.f32.gmra.mrb[16].mxu0 %vm87_vm0, %v2082_v50  ;;  %1610 = vmatmul.mubr.msk.f32.gmra.mrb[46].mxu1 %vm87_vm0, %v43_v11 }
  0x68   : > { %1456 = vmatprep.mubr.msk.f32.mxu0 %vm87_vm0, %v2097_v55  ;;  %1612 = vmatprep.mubr.msk.f32.mxu1 %vm1931_vm1, %v1930_v0 }
  0x6b   : > { %1457 = vmatmul.mubr.msk.f32.gmra.mrb[18].mxu0 %vm87_vm0, %v2097_v55  ;;  %1613 = vmatmul.mubr.msk.f32.gmra.mrb[48].mxu1 %vm87_vm0, %v44_v12 }
  0x6c   : > { %1458 = vmatprep.mubr.msk.f32.mxu0 %vm87_vm0, %v2104_v58  ;;  %1615 = vmatprep.mubr.msk.f32.mxu1 %vm1931_vm1, %v1930_v0 }
  0x6f   : > { %1459 = vmatmul.mubr.msk.f32.gmra.mrb[20].mxu0 %vm87_vm0, %v2104_v58  ;;  %1616 = vmatmul.mubr.msk.f32.gmra.mrb[50].mxu1 %vm87_vm0, %v45_v13 }
  0x70   : > { %1460 = vmatprep.mubr.msk.f32.mxu0 %vm87_vm0, %v2117_v61  ;;  %1618 = vmatprep.mubr.msk.f32.mxu1 %vm1931_vm1, %v1930_v0 }
  0x73   : > { %1461 = vmatmul.mubr.msk.f32.gmra.mrb[22].mxu0 %vm87_vm0, %v2117_v61  ;;  %1619 = vmatmul.mubr.msk.f32.gmra.mrb[52].mxu1 %vm87_vm0, %v46_v14 }
  0x74   : > { %1462 = vmatprep.mubr.msk.f32.mxu0 %vm87_vm0, %v2124_v63  ;;  %1621 = vmatprep.mubr.msk.f32.mxu1 %vm1931_vm1, %v1930_v0 }
  0x77   : > { %1463 = vmatmul.mubr.msk.f32.gmra.mrb[24].mxu0 %vm87_vm0, %v2124_v63  ;;  %1622 = vmatmul.mubr.msk.f32.gmra.mrb[54].mxu1 %vm87_vm0, %v47_v15 }
  0x78   : > { %1464 = vmatprep.mubr.msk.f32.mxu0 %vm87_vm0, %v2133_v2  ;;  %1624 = vmatprep.mubr.msk.f32.mxu1 %vm1931_vm1, %v1930_v0 }
  0x7b   : > { %1465 = vmatmul.mubr.msk.f32.gmra.mrb[26].mxu0 %vm87_vm0, %v2133_v2  ;;  %1625 = vmatmul.mubr.msk.f32.gmra.mrb[56].mxu1 %vm87_vm0, %v48_v16 }
  0x7c   : > { %1466 = vmatprep.mubr.msk.f32.mxu0 %vm87_vm0, %v2142_v3  ;;  %1627 = vmatprep.mubr.msk.f32.mxu1 %vm1931_vm1, %v1930_v0 }
  0x7f   : > { %1467 = vmatmul.mubr.msk.f32.gmra.mrb[28].mxu0 %vm87_vm0, %v2142_v3  ;;  %1628 = vmatmul.mubr.msk.f32.gmra.mrb[58].mxu1 %vm87_vm0, %v49_v17 }
  0x80   : > { %1468 = vmatprep.mubr.msk.f32.mxu0 %vm87_vm0, %v2153_v1  ;;  %1630 = vmatprep.mubr.msk.f32.mxu1 %vm1931_vm1, %v1930_v0 }
  0x83   : > { %1469 = vmatmul.mubr.msk.f32.gmra.mrb[30].mxu0 %vm87_vm0, %v2153_v1  ;;  %1631 = vmatmul.mubr.msk.f32.gmra.mrb[60].mxu1 %vm87_vm0, %v50_v18 }
  0x84   : > { %1470 = vmatprep.mubr.msk.f32.mxu0 %vm87_vm0, %v2164_v4  ;;  %1633 = vmatprep.mubr.msk.f32.mxu1 %vm1931_vm1, %v1930_v0 }
  0x87   : > { %1471 = vmatmul.mubr.msk.f32.gmra.mrb[32].mxu0 %vm87_vm0, %v2164_v4  ;;  %1634 = vmatmul.mubr.msk.f32.gmra.mrb[62].mxu1 %vm87_vm0, %v51_v19 }
  0x88   : > { %1472 = vmatprep.mubr.msk.f32.mxu0 %vm87_vm0, %v2175_v5  ;;  %1636 = vmatprep.mubr.msk.f32.mxu1 %vm1931_vm1, %v1930_v0 }
  0x8b   : > { %1473 = vmatmul.mubr.msk.f32.gmra.mrb[34].mxu0 %vm87_vm0, %v2175_v5  ;;  %1637 = vmatmul.mubr.msk.f32.gmra.mrb[64].mxu1 %vm87_vm0, %v52_v20 }
  0x8c   : > { %1474 = vmatprep.mubr.msk.f32.mxu0 %vm87_vm0, %v2186_v6 }
  0x8f   : > { %1475 = vmatmul.mubr.msk.f32.gmra.mrb[36].mxu0 %vm87_vm0, %v2186_v6 }
  0x90   : > { %1476 = vmatprep.mubr.msk.f32.mxu0 %vm87_vm0, %v2197_v7 }
  0x93   : > { %1477 = vmatmul.mubr.msk.f32.gmra.mrb[38].mxu0 %vm87_vm0, %v2197_v7 }
  0x94   : > { %1478 = vmatprep.mubr.msk.f32.mxu0 %vm87_vm0, %v2208_v8 }
  0x97   : > { %1479 = vmatmul.mubr.msk.f32.gmra.mrb[40].mxu0 %vm87_vm0, %v2208_v8 }
  0x98   : > { %1480 = vmatprep.mubr.msk.f32.mxu0 %vm87_vm0, %v2219_v9 }
  0x9b   : > { %1481 = vmatmul.mubr.msk.f32.gmra.mrb[42].mxu0 %vm87_vm0, %v2219_v9 }
  0x9c   : > { %1482 = vmatprep.mubr.msk.f32.mxu0 %vm87_vm0, %v42_v10 }
  0x9f   : > { %1483 = vmatmul.mubr.msk.f32.gmra.mrb[44].mxu0 %vm87_vm0, %v42_v10 }
  0xa0   : > { %1484 = vmatprep.mubr.msk.f32.mxu0 %vm87_vm0, %v43_v11 }
  0xa3   : > { %1485 = vmatmul.mubr.msk.f32.gmra.mrb[46].mxu0 %vm87_vm0, %v43_v11 }
  0xa4   : > { %1486 = vmatprep.mubr.msk.f32.mxu0 %vm87_vm0, %v44_v12 }
  0xa7   : > { %1487 = vmatmul.mubr.msk.f32.gmra.mrb[48].mxu0 %vm87_vm0, %v44_v12 }
  0xa8   : > { %1488 = vmatprep.mubr.msk.f32.mxu0 %vm87_vm0, %v45_v13 }
  0xab   : > { %1489 = vmatmul.mubr.msk.f32.gmra.mrb[50].mxu0 %vm87_vm0, %v45_v13 }
  0xac   : > { %1490 = vmatprep.mubr.msk.f32.mxu0 %vm87_vm0, %v46_v14 }
  0xaf   : > { %1491 = vmatmul.mubr.msk.f32.gmra.mrb[52].mxu0 %vm87_vm0, %v46_v14 }
  0xb0   : > { %1492 = vmatprep.mubr.msk.f32.mxu0 %vm87_vm0, %v47_v15 }
  0xb3   : > { %1493 = vmatmul.mubr.msk.f32.gmra.mrb[54].mxu0 %vm87_vm0, %v47_v15 }
  0xb4   : > { %1494 = vmatprep.mubr.msk.f32.mxu0 %vm87_vm0, %v48_v16 }
  0xb7   : > { %1495 = vmatmul.mubr.msk.f32.gmra.mrb[56].mxu0 %vm87_vm0, %v48_v16 }
  0xb8   : > { %1496 = vmatprep.mubr.msk.f32.mxu0 %vm87_vm0, %v49_v17 }
  0xbb   : > { %1497 = vmatmul.mubr.msk.f32.gmra.mrb[58].mxu0 %vm87_vm0, %v49_v17 }
  0xbc   : > { %1498 = vmatprep.mubr.msk.f32.mxu0 %vm87_vm0, %v50_v18 }
  0xbf   : > { %1499 = vmatmul.mubr.msk.f32.gmra.mrb[60].mxu0 %vm87_vm0, %v50_v18 }
  0xc0   : > { %1500 = vmatprep.mubr.msk.f32.mxu0 %vm87_vm0, %v51_v19 }
  0xc3   : > { %1501 = vmatmul.mubr.msk.f32.gmra.mrb[62].mxu0 %vm87_vm0, %v51_v19 }
  0xc4   : > { %1502 = vmatprep.mubr.msk.f32.mxu0 %vm87_vm0, %v52_v20 }
  0xc7   : > { %1503 = vmatmul.mubr.msk.f32.gmra.mrb[64].mxu0 %vm87_vm0, %v52_v20 }
  0xde   : > { %v615_v0 = vpop.f32.mrb[0].mxu1 }
  0xdf   : > { %v781_v21 = vmul.f32 0.5, %v615_v0  ;;  %v1542_v22 = vpop.f32.mrb[1].mxu1 }
  0xe1   : > { %1700 = vtanh.f32 %v781_v21 }
  0xe2   : > { %v620_v23 = vpop.f32.mrb[2].mxu1 }
  0xe3   : > { %v784_v24 = vmul.f32 0.5, %v620_v23  ;;  %v1545_v25 = vpop.f32.mrb[3].mxu1 }
  0xe5   : > { %1702 = vtanh.f32 %v784_v24 }
  0xe6   : > { %v625_v26 = vpop.f32.mrb[4].mxu1 }
  0xe7   : > { %v787_v27 = vmul.f32 0.5, %v625_v26  ;;  %v1548_v28 = vpop.f32.mrb[5].mxu1 }
  0xe9   : > { %1704 = vtanh.f32 %v787_v27 }
  0xea   : > { %v630_v29 = vpop.f32.mrb[6].mxu1 }
  0xeb   : > { %v1701_v30 = vpop.eup %1700  ;;  %v790_v31 = vmul.f32 0.5, %v630_v29  ;;  %v1551_v32 = vpop.f32.mrb[7].mxu1 }
  0xec   : > { %v979_v33 = vmul.f32 0.5, %v1701_v30 }
  0xed   : > { %1706 = vtanh.f32 %v790_v31 }
  0xee   : > { %v1078_v34 = vadd.f32 0.5, %v979_v33  ;;  %v635_v35 = vpop.f32.mrb[8].mxu1 }
  0xef   : > { %v1703_v36 = vpop.eup %1702  ;;  %v793_v37 = vmul.f32 0.5, %v635_v35  ;;  %v1554_v38 = vpop.f32.mrb[9].mxu1 }
  0xf0   : > { %1181 = vst.msk [vmem:[%s2348_s18 + $0x10] sm:$0xff] %vm1180_vm3, %v1078_v34  ;;  %v982_v39 = vmul.f32 0.5, %v1703_v36 }
  0xf1   : > { %1708 = vtanh.f32 %v793_v37 }
  0xf2   : > { %v1081_v40 = vadd.f32 0.5, %v982_v39  ;;  %v640_v41 = vpop.f32.mrb[10].mxu1 }
  0xf3   : > { %v1705_v42 = vpop.eup %1704  ;;  %v796_v43 = vmul.f32 0.5, %v640_v41  ;;  %v1557_v44 = vpop.f32.mrb[11].mxu1 }
  0xf4   : > { %1184 = vst.msk [vmem:[%s2348_s18 + $0x28] sm:$0xff] %vm1180_vm3, %v1081_v40  ;;  %v985_v45 = vmul.f32 0.5, %v1705_v42 }
  0xf5   : > { %1710 = vtanh.f32 %v796_v43 }
  0xf6   : > { %v1084_v46 = vadd.f32 0.5, %v985_v45  ;;  %v645_v47 = vpop.f32.mrb[12].mxu1 }
  0xf7   : > { %v1707_v48 = vpop.eup %1706  ;;  %v799_v49 = vmul.f32 0.5, %v645_v47  ;;  %v1560_v50 = vpop.f32.mrb[13].mxu1 }
  0xf8   : > { %1187 = vst.msk [vmem:[%s2348_s18 + $0x40] sm:$0xff] %vm1180_vm3, %v1084_v46  ;;  %v988_v51 = vmul.f32 0.5, %v1707_v48 }
  0xf9   : > { %1712 = vtanh.f32 %v799_v49 }
  0xfa   : > { %v1087_v52 = vadd.f32 0.5, %v988_v51  ;;  %v650_v53 = vpop.f32.mrb[14].mxu1 }
  0xfb   : > { %v1709_v54 = vpop.eup %1708  ;;  %v802_v55 = vmul.f32 0.5, %v650_v53  ;;  %v1563_v56 = vpop.f32.mrb[15].mxu1 }
  0xfc   : > { %1190 = vst.msk [vmem:[%s2348_s18 + $0x58] sm:$0xff] %vm1180_vm3, %v1087_v52  ;;  %v991_v57 = vmul.f32 0.5, %v1709_v54 }
  0xfd   : > { %1714 = vtanh.f32 %v802_v55 }
  0xfe   : > { %v1090_v58 = vadd.f32 0.5, %v991_v57  ;;  %v655_v59 = vpop.f32.mrb[16].mxu1 }
  0xff   : > { %v1711_v60 = vpop.eup %1710  ;;  %v805_v61 = vmul.f32 0.5, %v655_v59  ;;  %v1566_v62 = vpop.f32.mrb[17].mxu1 }
 0x100   : > { %1193 = vst.msk [vmem:[%s2348_s18 + $0x70] sm:$0xff] %vm1180_vm3, %v1090_v58  ;;  %v994_v63 = vmul.f32 0.5, %v1711_v60 }
 0x101   : > { %1716 = vtanh.f32 %v805_v61 }
 0x102   : > { %v1093_v2 = vadd.f32 0.5, %v994_v63  ;;  %v660_v3 = vpop.f32.mrb[18].mxu1 }
 0x103   : > { %v1713_v1 = vpop.eup %1712  ;;  %v808_v4 = vmul.f32 0.5, %v660_v3  ;;  %v1569_v5 = vpop.f32.mrb[19].mxu1 }
 0x104   : > { %1196 = vst.msk [vmem:[%s2348_s18 + $0x88] sm:$0xff] %vm1180_vm3, %v1093_v2  ;;  %v997_v6 = vmul.f32 0.5, %v1713_v1 }
 0x105   : > { %1718 = vtanh.f32 %v808_v4 }
 0x106   : > { %v1096_v7 = vadd.f32 0.5, %v997_v6  ;;  %v665_v8 = vpop.f32.mrb[20].mxu1 }
 0x107   : > { %v1715_v9 = vpop.eup %1714  ;;  %v811_v10 = vmul.f32 0.5, %v665_v8  ;;  %v1572_v11 = vpop.f32.mrb[21].mxu1 }
 0x108   : > { %1199 = vst.msk [vmem:[%s2348_s18 + $0xa0] sm:$0xff] %vm1180_vm3, %v1096_v7  ;;  %v1000_v12 = vmul.f32 0.5, %v1715_v9 }
 0x109   : > { %1720 = vtanh.f32 %v811_v10 }
 0x10a   : > { %v1099_v13 = vadd.f32 0.5, %v1000_v12  ;;  %v670_v14 = vpop.f32.mrb[22].mxu1 }
 0x10b   : > { %v1717_v15 = vpop.eup %1716  ;;  %v814_v16 = vmul.f32 0.5, %v670_v14  ;;  %v1575_v17 = vpop.f32.mrb[23].mxu1 }
 0x10c   : > { %1202 = vst.msk [vmem:[%s2348_s18 + $0xb8] sm:$0xff] %vm1180_vm3, %v1099_v13  ;;  %v1003_v18 = vmul.f32 0.5, %v1717_v15 }
 0x10d   : > { %1722 = vtanh.f32 %v814_v16 }
 0x10e   : > { %v1102_v19 = vadd.f32 0.5, %v1003_v18  ;;  %v675_v20 = vpop.f32.mrb[24].mxu1 }
 0x10f   : > { %v1719_v0 = vpop.eup %1718  ;;  %v817_v21 = vmul.f32 0.5, %v675_v20  ;;  %v1578_v22 = vpop.f32.mrb[25].mxu1 }
 0x110   : > { %1205 = vst.msk [vmem:[%s2348_s18 + $0xd0] sm:$0xff] %vm1180_vm3, %v1102_v19  ;;  %v1006_v23 = vmul.f32 0.5, %v1719_v0 }
 0x111   : > { %1724 = vtanh.f32 %v817_v21 }
 0x112   : > { %v1105_v24 = vadd.f32 0.5, %v1006_v23  ;;  %v680_v25 = vpop.f32.mrb[26].mxu1 }
 0x113   : > { %v1721_v26 = vpop.eup %1720  ;;  %v820_v28 = vmul.f32 0.5, %v680_v25  ;;  %v1581_v29 = vpop.f32.mrb[27].mxu1 }
 0x114   : > { %1208 = vst.msk [vmem:[%s2348_s18 + $0xe8] sm:$0xff] %vm1180_vm3, %v1105_v24  ;;  %v1009_v32 = vmul.f32 0.5, %v1721_v26 }
 0x115   : > { %1726 = vtanh.f32 %v820_v28 }
 0x116   : > { %v1108_v34 = vadd.f32 0.5, %v1009_v32  ;;  %v685_v35 = vpop.f32.mrb[28].mxu1 }
 0x117   : > { %v1723_v36 = vpop.eup %1722  ;;  %v823_v38 = vmul.f32 0.5, %v685_v35  ;;  %v1584_v39 = vpop.f32.mrb[29].mxu1 }
 0x118   : > { %1211 = vst.msk [vmem:[%s2348_s18 + $0x100] sm:$0xff] %vm1180_vm3, %v1108_v34  ;;  %v1012_v42 = vmul.f32 0.5, %v1723_v36 }
 0x11a   : > { %v352_v27 = vpop.f32.mrb[0].mxu0  ;;  %v1111_v44 = vadd.f32 0.5, %v1012_v42  ;;  %v690_v45 = vpop.f32.mrb[30].mxu1 }
 0x11b   : > { %v779_v30 = vmul.f32 0.5, %v352_v27  ;;  %v354_v31 = vpop.f32.mrb[1].mxu0  ;;  %v1725_v46 = vpop.eup %1724  ;;  %v826_v48 = vmul.f32 0.5, %v690_v45 }
 0x11c   : > { %v780_v33 = vmul.f32 0.5, %v354_v31  ;;  %v1587_v49 = vpop.f32.mrb[31].mxu1  ;;  %1214 = vst.msk [vmem:[%s2348_s18 + $0x118] sm:$0xff] %vm1180_vm3, %v1111_v44  ;;  %v1015_v52 = vmul.f32 0.5, %v1725_v46 }
 0x11d   : > { %1728 = vtanh.f32 %v779_v30 }
 0x11e   : > { %1730 = vtanh.f32 %v780_v33  ;;  %v358_v37 = vpop.f32.mrb[2].mxu0  ;;  %v1114_v54 = vadd.f32 0.5, %v1015_v52  ;;  %v695_v55 = vpop.f32.mrb[32].mxu1 }
 0x11f   : > { %v782_v40 = vmul.f32 0.5, %v358_v37  ;;  %v360_v41 = vpop.f32.mrb[3].mxu0  ;;  %1732 = vtanh.f32 %v823_v38  ;;  %v1727_v56 = vpop.eup %1726  ;;  %v829_v58 = vmul.f32 0.5, %v695_v55 }
 0x120   : > { %v783_v43 = vmul.f32 0.5, %v360_v41  ;;  %v1590_v59 = vpop.f32.mrb[33].mxu1  ;;  %1217 = vst.msk [vmem:[%s2348_s18 + $0x130] sm:$0xff] %vm1180_vm3, %v1114_v54  ;;  %v1018_v63 = vmul.f32 0.5, %v1727_v56 }
 0x121   : > { %1734 = vtanh.f32 %v782_v40 }
 0x122   : > { %1736 = vtanh.f32 %v783_v43  ;;  %v364_v47 = vpop.f32.mrb[4].mxu0  ;;  %v1117_v5 = vadd.f32 0.5, %v1018_v63  ;;  %v700_v6 = vpop.f32.mrb[34].mxu1 }
 0x123   : > { %v785_v50 = vmul.f32 0.5, %v364_v47  ;;  %v366_v51 = vpop.f32.mrb[5].mxu0  ;;  %1738 = vtanh.f32 %v826_v48  ;;  %v832_v10 = vmul.f32 0.5, %v700_v6  ;;  %v1593_v11 = vpop.f32.mrb[35].mxu1 }
 0x124   : > { %v786_v53 = vmul.f32 0.5, %v366_v51  ;;  %1220 = vst.msk [vmem:[%s2348_s18 + $0x148] sm:$0xff] %vm1180_vm3, %v1117_v5 }
 0x125   : > { %1740 = vtanh.f32 %v785_v50 }
 0x126   : > { %1742 = vtanh.f32 %v786_v53  ;;  %v370_v57 = vpop.f32.mrb[6].mxu0  ;;  %v705_v21 = vpop.f32.mrb[36].mxu1 }
 0x127   : > { %v1729_v60 = vpop.eup %1728  ;;  %v788_v61 = vmul.f32 0.5, %v370_v57  ;;  %v372_v62 = vpop.f32.mrb[7].mxu0  ;;  %1744 = vtanh.f32 %v829_v58  ;;  %v835_v25 = vmul.f32 0.5, %v705_v21 }
 0x128   : > { %v1731_v2 = vpop.eup %1730  ;;  %v977_v3 = vmul.f32 0.5, %v1729_v60  ;;  %v789_v1 = vmul.f32 0.5, %v372_v62  ;;  %v1596_v26 = vpop.f32.mrb[37].mxu1 }
 0x129   : > { %v978_v4 = vmul.f32 0.5, %v1731_v2  ;;  %1746 = vtanh.f32 %v788_v61  ;;  %v1733_v7 = vpop.eup %1732 }
 0x12a   : > { %v1076_v8 = vadd.f32 0.5, %v977_v3  ;;  %1748 = vtanh.f32 %v789_v1  ;;  %v376_v9 = vpop.f32.mrb[8].mxu0  ;;  %v1021_v16 = vmul.f32 0.5, %v1733_v7  ;;  %v710_v37 = vpop.f32.mrb[38].mxu1 }
 0x12b   : > { %v1735_v12 = vpop.eup %1734  ;;  %v1077_v13 = vadd.f32 0.5, %v978_v4  ;;  %v791_v14 = vmul.f32 0.5, %v376_v9  ;;  %v378_v15 = vpop.f32.mrb[9].mxu0  ;;  %1750 = vtanh.f32 %v832_v10  ;;  %v838_v41 = vmul.f32 0.5, %v710_v37 }
 0x12c   : > { %v1737_v17 = vpop.eup %1736  ;;  %1178 = vst [vmem:[%s2348_s18] sm:$0xff] %v1076_v8  ;;  %v980_v18 = vmul.f32 0.5, %v1735_v12  ;;  %v792_v19 = vmul.f32 0.5, %v378_v15  ;;  %v1120_v0 = vadd.f32 0.5, %v1021_v16  ;;  %v1599_v42 = vpop.f32.mrb[39].mxu1 }
 0x12d   : > { %1179 = vst [vmem:[%s2348_s18 + $0x8] sm:$0xff] %v1077_v13  ;;  %v981_v20 = vmul.f32 0.5, %v1737_v17  ;;  %1752 = vtanh.f32 %v791_v14  ;;  %v1739_v22 = vpop.eup %1738 }
 0x12e   : > { %v1079_v23 = vadd.f32 0.5, %v980_v18  ;;  %1754 = vtanh.f32 %v792_v19  ;;  %v382_v24 = vpop.f32.mrb[10].mxu0  ;;  %1223 = vst.msk [vmem:[%s2348_s18 + $0x160] sm:$0xff] %vm1180_vm3, %v1120_v0  ;;  %v1024_v31 = vmul.f32 0.5, %v1739_v22  ;;  %v715_v53 = vpop.f32.mrb[40].mxu1 }
 0x12f   : > { %v1741_v27 = vpop.eup %1740  ;;  %v1080_v28 = vadd.f32 0.5, %v981_v20  ;;  %v794_v29 = vmul.f32 0.5, %v382_v24  ;;  %v384_v30 = vpop.f32.mrb[11].mxu0  ;;  %1756 = vtanh.f32 %v835_v25  ;;  %v841_v57 = vmul.f32 0.5, %v715_v53 }
 0x130   : > { %v1743_v32 = vpop.eup %1742  ;;  %1182 = vst [vmem:[%s2348_s18 + $0x18] sm:$0xff] %v1079_v23  ;;  %v983_v33 = vmul.f32 0.5, %v1741_v27  ;;  %v795_v34 = vmul.f32 0.5, %v384_v30  ;;  %v1123_v36 = vadd.f32 0.5, %v1024_v31  ;;  %v1602_v58 = vpop.f32.mrb[41].mxu1 }
 0x131   : > { %1183 = vst [vmem:[%s2348_s18 + $0x20] sm:$0xff] %v1080_v28  ;;  %v984_v35 = vmul.f32 0.5, %v1743_v32  ;;  %1758 = vtanh.f32 %v794_v29  ;;  %v1745_v38 = vpop.eup %1744 }
 0x132   : > { %v1082_v39 = vadd.f32 0.5, %v983_v33  ;;  %1760 = vtanh.f32 %v795_v34  ;;  %v388_v40 = vpop.f32.mrb[12].mxu0  ;;  %1226 = vst.msk [vmem:[%s2348_s18 + $0x178] sm:$0xff] %vm1180_vm3, %v1123_v36  ;;  %v1027_v47 = vmul.f32 0.5, %v1745_v38  ;;  %v720_v6 = vpop.f32.mrb[42].mxu1 }
 0x133   : > { %v1747_v43 = vpop.eup %1746  ;;  %v1083_v44 = vadd.f32 0.5, %v984_v35  ;;  %v797_v45 = vmul.f32 0.5, %v388_v40  ;;  %v390_v46 = vpop.f32.mrb[13].mxu0  ;;  %1762 = vtanh.f32 %v838_v41  ;;  %v844_v10 = vmul.f32 0.5, %v720_v6 }
 0x134   : > { %v1749_v48 = vpop.eup %1748  ;;  %1185 = vst [vmem:[%s2348_s18 + $0x30] sm:$0xff] %v1082_v39  ;;  %v986_v49 = vmul.f32 0.5, %v1747_v43  ;;  %v798_v50 = vmul.f32 0.5, %v390_v46  ;;  %v1126_v52 = vadd.f32 0.5, %v1027_v47  ;;  %v1605_v11 = vpop.f32.mrb[43].mxu1 }
 0x135   : > { %1186 = vst [vmem:[%s2348_s18 + $0x38] sm:$0xff] %v1083_v44  ;;  %v987_v51 = vmul.f32 0.5, %v1749_v48  ;;  %1764 = vtanh.f32 %v797_v45  ;;  %v1751_v54 = vpop.eup %1750 }
 0x136   : > { %v1085_v55 = vadd.f32 0.5, %v986_v49  ;;  %1766 = vtanh.f32 %v798_v50  ;;  %v394_v56 = vpop.f32.mrb[14].mxu0  ;;  %1229 = vst.msk [vmem:[%s2348_s18 + $0x190] sm:$0xff] %vm1180_vm3, %v1126_v52  ;;  %v1030_v63 = vmul.f32 0.5, %v1751_v54  ;;  %v725_v21 = vpop.f32.mrb[44].mxu1 }
 0x137   : > { %v1753_v59 = vpop.eup %1752  ;;  %v1086_v60 = vadd.f32 0.5, %v987_v51  ;;  %v800_v61 = vmul.f32 0.5, %v394_v56  ;;  %v396_v62 = vpop.f32.mrb[15].mxu0  ;;  %1768 = vtanh.f32 %v841_v57  ;;  %v847_v25 = vmul.f32 0.5, %v725_v21 }
 0x138   : > { %v1755_v2 = vpop.eup %1754  ;;  %1188 = vst [vmem:[%s2348_s18 + $0x48] sm:$0xff] %v1085_v55  ;;  %v989_v3 = vmul.f32 0.5, %v1753_v59  ;;  %v801_v1 = vmul.f32 0.5, %v396_v62  ;;  %v1129_v5 = vadd.f32 0.5, %v1030_v63  ;;  %v1608_v26 = vpop.f32.mrb[45].mxu1 }
 0x139   : > { %1189 = vst [vmem:[%s2348_s18 + $0x50] sm:$0xff] %v1086_v60  ;;  %v990_v4 = vmul.f32 0.5, %v1755_v2  ;;  %1770 = vtanh.f32 %v800_v61  ;;  %v1757_v7 = vpop.eup %1756 }
 0x13a   : > { %v1088_v8 = vadd.f32 0.5, %v989_v3  ;;  %1772 = vtanh.f32 %v801_v1  ;;  %v400_v9 = vpop.f32.mrb[16].mxu0  ;;  %1232 = vst.msk [vmem:[%s2348_s18 + $0x1a8] sm:$0xff] %vm1180_vm3, %v1129_v5  ;;  %v1033_v16 = vmul.f32 0.5, %v1757_v7  ;;  %v730_v37 = vpop.f32.mrb[46].mxu1 }
 0x13b   : > { %v1759_v12 = vpop.eup %1758  ;;  %v1089_v13 = vadd.f32 0.5, %v990_v4  ;;  %v803_v14 = vmul.f32 0.5, %v400_v9  ;;  %v402_v15 = vpop.f32.mrb[17].mxu0  ;;  %1774 = vtanh.f32 %v844_v10  ;;  %v850_v41 = vmul.f32 0.5, %v730_v37 }
 0x13c   : > { %v1761_v17 = vpop.eup %1760  ;;  %1191 = vst [vmem:[%s2348_s18 + $0x60] sm:$0xff] %v1088_v8  ;;  %v992_v18 = vmul.f32 0.5, %v1759_v12  ;;  %v804_v19 = vmul.f32 0.5, %v402_v15  ;;  %v1132_v0 = vadd.f32 0.5, %v1033_v16  ;;  %v1611_v42 = vpop.f32.mrb[47].mxu1 }
 0x13d   : > { %1192 = vst [vmem:[%s2348_s18 + $0x68] sm:$0xff] %v1089_v13  ;;  %v993_v20 = vmul.f32 0.5, %v1761_v17  ;;  %1776 = vtanh.f32 %v803_v14  ;;  %v1763_v22 = vpop.eup %1762 }
 0x13e   : > { %v1091_v23 = vadd.f32 0.5, %v992_v18  ;;  %1778 = vtanh.f32 %v804_v19  ;;  %v406_v24 = vpop.f32.mrb[18].mxu0  ;;  %1235 = vst.msk [vmem:[%s2348_s18 + $0x1c0] sm:$0xff] %vm1180_vm3, %v1132_v0  ;;  %v1036_v31 = vmul.f32 0.5, %v1763_v22  ;;  %v735_v53 = vpop.f32.mrb[48].mxu1 }
 0x13f   : > { %v1765_v27 = vpop.eup %1764  ;;  %v1092_v28 = vadd.f32 0.5, %v993_v20  ;;  %v806_v29 = vmul.f32 0.5, %v406_v24  ;;  %v408_v30 = vpop.f32.mrb[19].mxu0  ;;  %1780 = vtanh.f32 %v847_v25  ;;  %v853_v57 = vmul.f32 0.5, %v735_v53 }
 0x140   : > { %v1767_v32 = vpop.eup %1766  ;;  %1194 = vst [vmem:[%s2348_s18 + $0x78] sm:$0xff] %v1091_v23  ;;  %v995_v33 = vmul.f32 0.5, %v1765_v27  ;;  %v807_v34 = vmul.f32 0.5, %v408_v30  ;;  %v1135_v36 = vadd.f32 0.5, %v1036_v31  ;;  %v1614_v58 = vpop.f32.mrb[49].mxu1 }
 0x141   : > { %1195 = vst [vmem:[%s2348_s18 + $0x80] sm:$0xff] %v1092_v28  ;;  %v996_v35 = vmul.f32 0.5, %v1767_v32  ;;  %1782 = vtanh.f32 %v806_v29  ;;  %v1769_v38 = vpop.eup %1768 }
 0x142   : > { %v1094_v39 = vadd.f32 0.5, %v995_v33  ;;  %1784 = vtanh.f32 %v807_v34  ;;  %v412_v40 = vpop.f32.mrb[20].mxu0  ;;  %1238 = vst.msk [vmem:[%s2348_s18 + $0x1d8] sm:$0xff] %vm1180_vm3, %v1135_v36  ;;  %v1039_v47 = vmul.f32 0.5, %v1769_v38  ;;  %v740_v6 = vpop.f32.mrb[50].mxu1 }
 0x143   : > { %v1771_v43 = vpop.eup %1770  ;;  %v1095_v44 = vadd.f32 0.5, %v996_v35  ;;  %v809_v45 = vmul.f32 0.5, %v412_v40  ;;  %v414_v46 = vpop.f32.mrb[21].mxu0  ;;  %1786 = vtanh.f32 %v850_v41  ;;  %v856_v10 = vmul.f32 0.5, %v740_v6 }
 0x144   : > { %v1773_v48 = vpop.eup %1772  ;;  %1197 = vst [vmem:[%s2348_s18 + $0x90] sm:$0xff] %v1094_v39  ;;  %v998_v49 = vmul.f32 0.5, %v1771_v43  ;;  %v810_v50 = vmul.f32 0.5, %v414_v46  ;;  %v1138_v52 = vadd.f32 0.5, %v1039_v47  ;;  %v1617_v11 = vpop.f32.mrb[51].mxu1 }
 0x145   : > { %1198 = vst [vmem:[%s2348_s18 + $0x98] sm:$0xff] %v1095_v44  ;;  %v999_v51 = vmul.f32 0.5, %v1773_v48  ;;  %1788 = vtanh.f32 %v809_v45  ;;  %v1775_v54 = vpop.eup %1774 }
 0x146   : > { %v1097_v55 = vadd.f32 0.5, %v998_v49  ;;  %1790 = vtanh.f32 %v810_v50  ;;  %v418_v56 = vpop.f32.mrb[22].mxu0  ;;  %1241 = vst.msk [vmem:[%s2348_s18 + $0x1f0] sm:$0xff] %vm1180_vm3, %v1138_v52  ;;  %v1042_v63 = vmul.f32 0.5, %v1775_v54  ;;  %v745_v21 = vpop.f32.mrb[52].mxu1 }
 0x147   : > { %v1777_v59 = vpop.eup %1776  ;;  %v1098_v60 = vadd.f32 0.5, %v999_v51  ;;  %v812_v61 = vmul.f32 0.5, %v418_v56  ;;  %v420_v62 = vpop.f32.mrb[23].mxu0  ;;  %1792 = vtanh.f32 %v853_v57  ;;  %v859_v25 = vmul.f32 0.5, %v745_v21 }
 0x148   : > { %v1779_v2 = vpop.eup %1778  ;;  %1200 = vst [vmem:[%s2348_s18 + $0xa8] sm:$0xff] %v1097_v55  ;;  %v1001_v3 = vmul.f32 0.5, %v1777_v59  ;;  %v813_v1 = vmul.f32 0.5, %v420_v62  ;;  %v1141_v5 = vadd.f32 0.5, %v1042_v63  ;;  %v1620_v26 = vpop.f32.mrb[53].mxu1 }
 0x149   : > { %1201 = vst [vmem:[%s2348_s18 + $0xb0] sm:$0xff] %v1098_v60  ;;  %v1002_v4 = vmul.f32 0.5, %v1779_v2  ;;  %1794 = vtanh.f32 %v812_v61  ;;  %v1781_v7 = vpop.eup %1780 }
 0x14a   : > { %v1100_v8 = vadd.f32 0.5, %v1001_v3  ;;  %1796 = vtanh.f32 %v813_v1  ;;  %v424_v9 = vpop.f32.mrb[24].mxu0  ;;  %1244 = vst.msk [vmem:[%s2348_s18 + $0x208] sm:$0xff] %vm1180_vm3, %v1141_v5  ;;  %v1045_v16 = vmul.f32 0.5, %v1781_v7  ;;  %v750_v37 = vpop.f32.mrb[54].mxu1 }
 0x14b   : > { %v1783_v12 = vpop.eup %1782  ;;  %v1101_v13 = vadd.f32 0.5, %v1002_v4  ;;  %v815_v14 = vmul.f32 0.5, %v424_v9  ;;  %v426_v15 = vpop.f32.mrb[25].mxu0  ;;  %1798 = vtanh.f32 %v856_v10  ;;  %v862_v41 = vmul.f32 0.5, %v750_v37 }
 0x14c   : > { %v1785_v17 = vpop.eup %1784  ;;  %1203 = vst [vmem:[%s2348_s18 + $0xc0] sm:$0xff] %v1100_v8  ;;  %v1004_v18 = vmul.f32 0.5, %v1783_v12  ;;  %v816_v19 = vmul.f32 0.5, %v426_v15  ;;  %v1144_v0 = vadd.f32 0.5, %v1045_v16  ;;  %v1623_v42 = vpop.f32.mrb[55].mxu1 }
 0x14d   : > { %1204 = vst [vmem:[%s2348_s18 + $0xc8] sm:$0xff] %v1101_v13  ;;  %v1005_v20 = vmul.f32 0.5, %v1785_v17  ;;  %1800 = vtanh.f32 %v815_v14  ;;  %v1787_v22 = vpop.eup %1786 }
 0x14e   : > { %v1103_v23 = vadd.f32 0.5, %v1004_v18  ;;  %1802 = vtanh.f32 %v816_v19  ;;  %v430_v24 = vpop.f32.mrb[26].mxu0  ;;  %1247 = vst.msk [vmem:[%s2348_s18 + $0x220] sm:$0xff] %vm1180_vm3, %v1144_v0  ;;  %v1048_v31 = vmul.f32 0.5, %v1787_v22  ;;  %v755_v53 = vpop.f32.mrb[56].mxu1 }
 0x14f   : > { %v1789_v27 = vpop.eup %1788  ;;  %v1104_v28 = vadd.f32 0.5, %v1005_v20  ;;  %v818_v29 = vmul.f32 0.5, %v430_v24  ;;  %v432_v30 = vpop.f32.mrb[27].mxu0  ;;  %1804 = vtanh.f32 %v859_v25  ;;  %v865_v57 = vmul.f32 0.5, %v755_v53 }
 0x150   : > { %v1791_v32 = vpop.eup %1790  ;;  %1206 = vst [vmem:[%s2348_s18 + $0xd8] sm:$0xff] %v1103_v23  ;;  %v1007_v33 = vmul.f32 0.5, %v1789_v27  ;;  %v819_v34 = vmul.f32 0.5, %v432_v30  ;;  %v1147_v36 = vadd.f32 0.5, %v1048_v31  ;;  %v1626_v58 = vpop.f32.mrb[57].mxu1 }
 0x151   : > { %1207 = vst [vmem:[%s2348_s18 + $0xe0] sm:$0xff] %v1104_v28  ;;  %v1008_v35 = vmul.f32 0.5, %v1791_v32  ;;  %1806 = vtanh.f32 %v818_v29  ;;  %v1793_v38 = vpop.eup %1792 }
 0x152   : > { %v1106_v39 = vadd.f32 0.5, %v1007_v33  ;;  %1808 = vtanh.f32 %v819_v34  ;;  %v436_v40 = vpop.f32.mrb[28].mxu0  ;;  %1250 = vst.msk [vmem:[%s2348_s18 + $0x238] sm:$0xff] %vm1180_vm3, %v1147_v36  ;;  %v1051_v47 = vmul.f32 0.5, %v1793_v38  ;;  %v760_v6 = vpop.f32.mrb[58].mxu1 }
 0x153   : > { %v1795_v43 = vpop.eup %1794  ;;  %v1107_v44 = vadd.f32 0.5, %v1008_v35  ;;  %v821_v45 = vmul.f32 0.5, %v436_v40  ;;  %v438_v46 = vpop.f32.mrb[29].mxu0  ;;  %1810 = vtanh.f32 %v862_v41  ;;  %v868_v10 = vmul.f32 0.5, %v760_v6 }
 0x154   : > { %v1797_v48 = vpop.eup %1796  ;;  %1209 = vst [vmem:[%s2348_s18 + $0xf0] sm:$0xff] %v1106_v39  ;;  %v1010_v49 = vmul.f32 0.5, %v1795_v43  ;;  %v822_v50 = vmul.f32 0.5, %v438_v46  ;;  %v1150_v52 = vadd.f32 0.5, %v1051_v47  ;;  %v1629_v11 = vpop.f32.mrb[59].mxu1 }
 0x155   : > { %1210 = vst [vmem:[%s2348_s18 + $0xf8] sm:$0xff] %v1107_v44  ;;  %v1011_v51 = vmul.f32 0.5, %v1797_v48  ;;  %1812 = vtanh.f32 %v821_v45  ;;  %v1799_v54 = vpop.eup %1798 }
 0x156   : > { %v1109_v55 = vadd.f32 0.5, %v1010_v49  ;;  %1814 = vtanh.f32 %v822_v50  ;;  %v442_v56 = vpop.f32.mrb[30].mxu0  ;;  %1253 = vst.msk [vmem:[%s2348_s18 + $0x250] sm:$0xff] %vm1180_vm3, %v1150_v52  ;;  %v1054_v63 = vmul.f32 0.5, %v1799_v54  ;;  %v765_v21 = vpop.f32.mrb[60].mxu1 }
 0x157   : > { %v1801_v59 = vpop.eup %1800  ;;  %v1110_v60 = vadd.f32 0.5, %v1011_v51  ;;  %v824_v61 = vmul.f32 0.5, %v442_v56  ;;  %v444_v62 = vpop.f32.mrb[31].mxu0  ;;  %1816 = vtanh.f32 %v865_v57  ;;  %v871_v25 = vmul.f32 0.5, %v765_v21 }
 0x158   : > { %v1803_v2 = vpop.eup %1802  ;;  %1212 = vst [vmem:[%s2348_s18 + $0x108] sm:$0xff] %v1109_v55  ;;  %v1013_v3 = vmul.f32 0.5, %v1801_v59  ;;  %v825_v1 = vmul.f32 0.5, %v444_v62  ;;  %v1153_v5 = vadd.f32 0.5, %v1054_v63  ;;  %v1632_v26 = vpop.f32.mrb[61].mxu1 }
 0x159   : > { %1213 = vst [vmem:[%s2348_s18 + $0x110] sm:$0xff] %v1110_v60  ;;  %v1014_v4 = vmul.f32 0.5, %v1803_v2  ;;  %1818 = vtanh.f32 %v824_v61  ;;  %v1805_v7 = vpop.eup %1804 }
 0x15a   : > { %v1112_v8 = vadd.f32 0.5, %v1013_v3  ;;  %1820 = vtanh.f32 %v825_v1  ;;  %v448_v9 = vpop.f32.mrb[32].mxu0  ;;  %1256 = vst.msk [vmem:[%s2348_s18 + $0x268] sm:$0xff] %vm1180_vm3, %v1153_v5  ;;  %v1057_v16 = vmul.f32 0.5, %v1805_v7  ;;  %v770_v37 = vpop.f32.mrb[62].mxu1 }
 0x15b   : > { %v1807_v12 = vpop.eup %1806  ;;  %v1113_v13 = vadd.f32 0.5, %v1014_v4  ;;  %v827_v14 = vmul.f32 0.5, %v448_v9  ;;  %v450_v15 = vpop.f32.mrb[33].mxu0  ;;  %1822 = vtanh.f32 %v868_v10  ;;  %v874_v41 = vmul.f32 0.5, %v770_v37 }
 0x15c   : > { %v1809_v17 = vpop.eup %1808  ;;  %1215 = vst [vmem:[%s2348_s18 + $0x120] sm:$0xff] %v1112_v8  ;;  %v1016_v18 = vmul.f32 0.5, %v1807_v12  ;;  %v828_v19 = vmul.f32 0.5, %v450_v15  ;;  %v1156_v0 = vadd.f32 0.5, %v1057_v16  ;;  %v1635_v42 = vpop.f32.mrb[63].mxu1 }
 0x15d   : > { %1216 = vst [vmem:[%s2348_s18 + $0x128] sm:$0xff] %v1113_v13  ;;  %v1017_v20 = vmul.f32 0.5, %v1809_v17  ;;  %1824 = vtanh.f32 %v827_v14  ;;  %v1811_v22 = vpop.eup %1810 }
 0x15e   : > { %v1115_v23 = vadd.f32 0.5, %v1016_v18  ;;  %1826 = vtanh.f32 %v828_v19  ;;  %v454_v24 = vpop.f32.mrb[34].mxu0  ;;  %1259 = vst.msk [vmem:[%s2348_s18 + $0x280] sm:$0xff] %vm1180_vm3, %v1156_v0  ;;  %v1060_v31 = vmul.f32 0.5, %v1811_v22  ;;  %v775_v53 = vpop.f32.mrb[64].mxu1 }
 0x15f   : > { %v1813_v27 = vpop.eup %1812  ;;  %v1116_v28 = vadd.f32 0.5, %v1017_v20  ;;  %v830_v29 = vmul.f32 0.5, %v454_v24  ;;  %v456_v30 = vpop.f32.mrb[35].mxu0  ;;  %1828 = vtanh.f32 %v871_v25  ;;  %v877_v57 = vmul.f32 0.5, %v775_v53 }
 0x160   : > { %v1815_v32 = vpop.eup %1814  ;;  %1218 = vst [vmem:[%s2348_s18 + $0x138] sm:$0xff] %v1115_v23  ;;  %v1019_v33 = vmul.f32 0.5, %v1813_v27  ;;  %v831_v34 = vmul.f32 0.5, %v456_v30  ;;  %v1159_v36 = vadd.f32 0.5, %v1060_v31  ;;  %v1638_v58 = vpop.f32.mrb[65].mxu1 }
 0x161   : > { %1219 = vst [vmem:[%s2348_s18 + $0x140] sm:$0xff] %v1116_v28  ;;  %v1020_v35 = vmul.f32 0.5, %v1815_v32  ;;  %1830 = vtanh.f32 %v830_v29  ;;  %v1817_v38 = vpop.eup %1816 }
 0x162   : > { %v1118_v39 = vadd.f32 0.5, %v1019_v33  ;;  %1832 = vtanh.f32 %v831_v34  ;;  %v460_v40 = vpop.f32.mrb[36].mxu0  ;;  %1262 = vst.msk [vmem:[%s2348_s18 + $0x298] sm:$0xff] %vm1180_vm3, %v1159_v36  ;;  %v1063_v47 = vmul.f32 0.5, %v1817_v38 }
 0x163   : > { %v1819_v43 = vpop.eup %1818  ;;  %v1119_v44 = vadd.f32 0.5, %v1020_v35  ;;  %v833_v45 = vmul.f32 0.5, %v460_v40  ;;  %v462_v46 = vpop.f32.mrb[37].mxu0  ;;  %1834 = vtanh.f32 %v874_v41 }
 0x164   : > { %v1821_v48 = vpop.eup %1820  ;;  %1221 = vst [vmem:[%s2348_s18 + $0x150] sm:$0xff] %v1118_v39  ;;  %v1022_v49 = vmul.f32 0.5, %v1819_v43  ;;  %v834_v50 = vmul.f32 0.5, %v462_v46  ;;  %v1162_v52 = vadd.f32 0.5, %v1063_v47 }
 0x165   : > { %1222 = vst [vmem:[%s2348_s18 + $0x158] sm:$0xff] %v1119_v44  ;;  %v1023_v51 = vmul.f32 0.5, %v1821_v48  ;;  %1836 = vtanh.f32 %v833_v45  ;;  %v1823_v54 = vpop.eup %1822 }
 0x166   : > { %v1121_v55 = vadd.f32 0.5, %v1022_v49  ;;  %1838 = vtanh.f32 %v834_v50  ;;  %v466_v56 = vpop.f32.mrb[38].mxu0  ;;  %1265 = vst.msk [vmem:[%s2348_s18 + $0x2b0] sm:$0xff] %vm1180_vm3, %v1162_v52  ;;  %v1066_v63 = vmul.f32 0.5, %v1823_v54 }
 0x167   : > { %v1825_v59 = vpop.eup %1824  ;;  %v1122_v60 = vadd.f32 0.5, %v1023_v51  ;;  %v836_v61 = vmul.f32 0.5, %v466_v56  ;;  %v468_v62 = vpop.f32.mrb[39].mxu0  ;;  %1840 = vtanh.f32 %v877_v57 }
 0x168   : > { %v1827_v2 = vpop.eup %1826  ;;  %1224 = vst [vmem:[%s2348_s18 + $0x168] sm:$0xff] %v1121_v55  ;;  %v1025_v3 = vmul.f32 0.5, %v1825_v59  ;;  %v837_v1 = vmul.f32 0.5, %v468_v62  ;;  %v1165_v5 = vadd.f32 0.5, %v1066_v63 }
 0x169   : > { %1225 = vst [vmem:[%s2348_s18 + $0x170] sm:$0xff] %v1122_v60  ;;  %v1026_v4 = vmul.f32 0.5, %v1827_v2  ;;  %1842 = vtanh.f32 %v836_v61  ;;  %v1829_v6 = vpop.eup %1828 }
 0x16a   : > { %v1124_v7 = vadd.f32 0.5, %v1025_v3  ;;  %1844 = vtanh.f32 %v837_v1  ;;  %v472_v8 = vpop.f32.mrb[40].mxu0  ;;  %1268 = vst.msk [vmem:[%s2348_s18 + $0x2c8] sm:$0xff] %vm1180_vm3, %v1165_v5  ;;  %v1069_v13 = vmul.f32 0.5, %v1829_v6 }
 0x16b   : > { %v1831_v9 = vpop.eup %1830  ;;  %v1125_v10 = vadd.f32 0.5, %v1026_v4  ;;  %v839_v11 = vmul.f32 0.5, %v472_v8  ;;  %v474_v12 = vpop.f32.mrb[41].mxu0 }
 0x16c   : > { %v1833_v14 = vpop.eup %1832  ;;  %1227 = vst [vmem:[%s2348_s18 + $0x180] sm:$0xff] %v1124_v7  ;;  %v1028_v15 = vmul.f32 0.5, %v1831_v9  ;;  %v840_v16 = vmul.f32 0.5, %v474_v12  ;;  %v1168_v18 = vadd.f32 0.5, %v1069_v13 }
 0x16d   : > { %1228 = vst [vmem:[%s2348_s18 + $0x188] sm:$0xff] %v1125_v10  ;;  %v1029_v17 = vmul.f32 0.5, %v1833_v14  ;;  %1846 = vtanh.f32 %v839_v11  ;;  %v1835_v19 = vpop.eup %1834 }
 0x16e   : > { %v1127_v20 = vadd.f32 0.5, %v1028_v15  ;;  %1848 = vtanh.f32 %v840_v16  ;;  %v478_v0 = vpop.f32.mrb[42].mxu0  ;;  %1271 = vst.msk [vmem:[%s2348_s18 + $0x2e0] sm:$0xff] %vm1180_vm3, %v1168_v18  ;;  %v1072_v25 = vmul.f32 0.5, %v1835_v19 }
 0x16f   : > { %v1837_v21 = vpop.eup %1836  ;;  %v1128_v22 = vadd.f32 0.5, %v1029_v17  ;;  %v842_v23 = vmul.f32 0.5, %v478_v0  ;;  %v480_v24 = vpop.f32.mrb[43].mxu0 }
 0x170   : > { %v1839_v26 = vpop.eup %1838  ;;  %1230 = vst [vmem:[%s2348_s18 + $0x198] sm:$0xff] %v1127_v20  ;;  %v1031_v27 = vmul.f32 0.5, %v1837_v21  ;;  %v843_v28 = vmul.f32 0.5, %v480_v24  ;;  %v1171_v30 = vadd.f32 0.5, %v1072_v25 }
 0x171   : > { %1231 = vst [vmem:[%s2348_s18 + $0x1a0] sm:$0xff] %v1128_v22  ;;  %v1032_v29 = vmul.f32 0.5, %v1839_v26  ;;  %1850 = vtanh.f32 %v842_v23  ;;  %v1841_v31 = vpop.eup %1840 }
 0x172   : > { %v1130_v32 = vadd.f32 0.5, %v1031_v27  ;;  %1852 = vtanh.f32 %v843_v28  ;;  %v484_v33 = vpop.f32.mrb[44].mxu0  ;;  %1274 = vst.msk [vmem:[%s2348_s18 + $0x2f8] sm:$0xff] %vm1180_vm3, %v1171_v30  ;;  %v1075_v38 = vmul.f32 0.5, %v1841_v31 }
 0x173   : > { %v1843_v34 = vpop.eup %1842  ;;  %v1131_v35 = vadd.f32 0.5, %v1032_v29  ;;  %v845_v36 = vmul.f32 0.5, %v484_v33  ;;  %v486_v37 = vpop.f32.mrb[45].mxu0 }
 0x174   : > { %v1845_v39 = vpop.eup %1844  ;;  %1233 = vst [vmem:[%s2348_s18 + $0x1b0] sm:$0xff] %v1130_v32  ;;  %v1034_v40 = vmul.f32 0.5, %v1843_v34  ;;  %v846_v41 = vmul.f32 0.5, %v486_v37  ;;  %v1174_v43 = vadd.f32 0.5, %v1075_v38 }
 0x175   : > { %1234 = vst [vmem:[%s2348_s18 + $0x1b8] sm:$0xff] %v1131_v35  ;;  %v1035_v42 = vmul.f32 0.5, %v1845_v39  ;;  %1854 = vtanh.f32 %v845_v36 }
 0x176   : > { %v1133_v44 = vadd.f32 0.5, %v1034_v40  ;;  %1856 = vtanh.f32 %v846_v41  ;;  %v490_v45 = vpop.f32.mrb[46].mxu0  ;;  %1277 = vst.msk [vmem:[%s2348_s18 + $0x310] sm:$0xff] %vm1180_vm3, %v1174_v43 }
 0x177   : > { %v1847_v46 = vpop.eup %1846  ;;  %v1134_v47 = vadd.f32 0.5, %v1035_v42  ;;  %v848_v48 = vmul.f32 0.5, %v490_v45  ;;  %v492_v49 = vpop.f32.mrb[47].mxu0 }
 0x178   : > { %v1849_v50 = vpop.eup %1848  ;;  %1236 = vst [vmem:[%s2348_s18 + $0x1c8] sm:$0xff] %v1133_v44  ;;  %v1037_v51 = vmul.f32 0.5, %v1847_v46  ;;  %v849_v52 = vmul.f32 0.5, %v492_v49 }
 0x179   : > { %1237 = vst [vmem:[%s2348_s18 + $0x1d0] sm:$0xff] %v1134_v47  ;;  %v1038_v53 = vmul.f32 0.5, %v1849_v50  ;;  %1858 = vtanh.f32 %v848_v48 }
 0x17a   : > { %v1136_v54 = vadd.f32 0.5, %v1037_v51  ;;  %1860 = vtanh.f32 %v849_v52  ;;  %v496_v55 = vpop.f32.mrb[48].mxu0 }
 0x17b   : > { %v1851_v56 = vpop.eup %1850  ;;  %v1137_v57 = vadd.f32 0.5, %v1038_v53  ;;  %v851_v58 = vmul.f32 0.5, %v496_v55  ;;  %v498_v59 = vpop.f32.mrb[49].mxu0 }
 0x17c   : > { %v1853_v60 = vpop.eup %1852  ;;  %1239 = vst [vmem:[%s2348_s18 + $0x1e0] sm:$0xff] %v1136_v54  ;;  %v1040_v61 = vmul.f32 0.5, %v1851_v56  ;;  %v852_v62 = vmul.f32 0.5, %v498_v59 }
 0x17d   : > { %1240 = vst [vmem:[%s2348_s18 + $0x1e8] sm:$0xff] %v1137_v57  ;;  %v1041_v63 = vmul.f32 0.5, %v1853_v60  ;;  %1862 = vtanh.f32 %v851_v58 }
 0x17e   : > { %v1139_v2 = vadd.f32 0.5, %v1040_v61  ;;  %1864 = vtanh.f32 %v852_v62  ;;  %v502_v3 = vpop.f32.mrb[50].mxu0 }
 0x17f   : > { %v1855_v1 = vpop.eup %1854  ;;  %v1140_v4 = vadd.f32 0.5, %v1041_v63  ;;  %v854_v5 = vmul.f32 0.5, %v502_v3  ;;  %v504_v6 = vpop.f32.mrb[51].mxu0 }
 0x180   : > { %v1857_v7 = vpop.eup %1856  ;;  %1242 = vst [vmem:[%s2348_s18 + $0x1f8] sm:$0xff] %v1139_v2  ;;  %v1043_v8 = vmul.f32 0.5, %v1855_v1  ;;  %v855_v9 = vmul.f32 0.5, %v504_v6 }
 0x181   : > { %1243 = vst [vmem:[%s2348_s18 + $0x200] sm:$0xff] %v1140_v4  ;;  %v1044_v10 = vmul.f32 0.5, %v1857_v7  ;;  %1866 = vtanh.f32 %v854_v5 }
 0x182   : > { %v1142_v11 = vadd.f32 0.5, %v1043_v8  ;;  %1868 = vtanh.f32 %v855_v9  ;;  %v508_v12 = vpop.f32.mrb[52].mxu0 }
 0x183   : > { %v1859_v13 = vpop.eup %1858  ;;  %v1143_v14 = vadd.f32 0.5, %v1044_v10  ;;  %v857_v15 = vmul.f32 0.5, %v508_v12  ;;  %v510_v16 = vpop.f32.mrb[53].mxu0 }
 0x184   : > { %v1861_v17 = vpop.eup %1860  ;;  %1245 = vst [vmem:[%s2348_s18 + $0x210] sm:$0xff] %v1142_v11  ;;  %v1046_v18 = vmul.f32 0.5, %v1859_v13  ;;  %v858_v19 = vmul.f32 0.5, %v510_v16 }
 0x185   : > { %1246 = vst [vmem:[%s2348_s18 + $0x218] sm:$0xff] %v1143_v14  ;;  %v1047_v20 = vmul.f32 0.5, %v1861_v17  ;;  %1870 = vtanh.f32 %v857_v15 }
 0x186   : > { %v1145_v0 = vadd.f32 0.5, %v1046_v18  ;;  %1872 = vtanh.f32 %v858_v19  ;;  %v514_v21 = vpop.f32.mrb[54].mxu0 }
 0x187   : > { %v1863_v22 = vpop.eup %1862  ;;  %v1146_v23 = vadd.f32 0.5, %v1047_v20  ;;  %v860_v24 = vmul.f32 0.5, %v514_v21  ;;  %v516_v25 = vpop.f32.mrb[55].mxu0 }
 0x188   : > { %v1865_v26 = vpop.eup %1864  ;;  %1248 = vst [vmem:[%s2348_s18 + $0x228] sm:$0xff] %v1145_v0  ;;  %v1049_v27 = vmul.f32 0.5, %v1863_v22  ;;  %v861_v28 = vmul.f32 0.5, %v516_v25 }
 0x189   : > { %1249 = vst [vmem:[%s2348_s18 + $0x230] sm:$0xff] %v1146_v23  ;;  %v1050_v29 = vmul.f32 0.5, %v1865_v26  ;;  %1874 = vtanh.f32 %v860_v24 }
 0x18a   : > { %v1148_v30 = vadd.f32 0.5, %v1049_v27  ;;  %1876 = vtanh.f32 %v861_v28  ;;  %v520_v31 = vpop.f32.mrb[56].mxu0 }
 0x18b   : > { %v1867_v32 = vpop.eup %1866  ;;  %v1149_v33 = vadd.f32 0.5, %v1050_v29  ;;  %v863_v34 = vmul.f32 0.5, %v520_v31  ;;  %v522_v35 = vpop.f32.mrb[57].mxu0 }
 0x18c   : > { %v1869_v36 = vpop.eup %1868  ;;  %1251 = vst [vmem:[%s2348_s18 + $0x240] sm:$0xff] %v1148_v30  ;;  %v1052_v37 = vmul.f32 0.5, %v1867_v32  ;;  %v864_v38 = vmul.f32 0.5, %v522_v35 }
 0x18d   : > { %1252 = vst [vmem:[%s2348_s18 + $0x248] sm:$0xff] %v1149_v33  ;;  %v1053_v39 = vmul.f32 0.5, %v1869_v36  ;;  %1878 = vtanh.f32 %v863_v34 }
 0x18e   : > { %v1151_v40 = vadd.f32 0.5, %v1052_v37  ;;  %1880 = vtanh.f32 %v864_v38  ;;  %v526_v41 = vpop.f32.mrb[58].mxu0 }
 0x18f   : > { %v1871_v42 = vpop.eup %1870  ;;  %v1152_v43 = vadd.f32 0.5, %v1053_v39  ;;  %v866_v44 = vmul.f32 0.5, %v526_v41  ;;  %v528_v45 = vpop.f32.mrb[59].mxu0 }
 0x190   : > { %v1873_v46 = vpop.eup %1872  ;;  %1254 = vst [vmem:[%s2348_s18 + $0x258] sm:$0xff] %v1151_v40  ;;  %v1055_v47 = vmul.f32 0.5, %v1871_v42  ;;  %v867_v48 = vmul.f32 0.5, %v528_v45 }
 0x191   : > { %1255 = vst [vmem:[%s2348_s18 + $0x260] sm:$0xff] %v1152_v43  ;;  %v1056_v49 = vmul.f32 0.5, %v1873_v46  ;;  %1882 = vtanh.f32 %v866_v44 }
 0x192   : > { %v1154_v50 = vadd.f32 0.5, %v1055_v47  ;;  %1884 = vtanh.f32 %v867_v48  ;;  %v532_v51 = vpop.f32.mrb[60].mxu0 }
 0x193   : > { %v1875_v52 = vpop.eup %1874  ;;  %v1155_v53 = vadd.f32 0.5, %v1056_v49  ;;  %v869_v54 = vmul.f32 0.5, %v532_v51  ;;  %v534_v55 = vpop.f32.mrb[61].mxu0 }
 0x194   : > { %v1877_v56 = vpop.eup %1876  ;;  %1257 = vst [vmem:[%s2348_s18 + $0x270] sm:$0xff] %v1154_v50  ;;  %v1058_v57 = vmul.f32 0.5, %v1875_v52  ;;  %v870_v58 = vmul.f32 0.5, %v534_v55 }
 0x195   : > { %1258 = vst [vmem:[%s2348_s18 + $0x278] sm:$0xff] %v1155_v53  ;;  %v1059_v59 = vmul.f32 0.5, %v1877_v56  ;;  %1886 = vtanh.f32 %v869_v54 }
 0x196   : > { %v1157_v60 = vadd.f32 0.5, %v1058_v57  ;;  %1888 = vtanh.f32 %v870_v58  ;;  %v538_v61 = vpop.f32.mrb[62].mxu0 }
 0x197   : > { %v1879_v62 = vpop.eup %1878  ;;  %v1158_v63 = vadd.f32 0.5, %v1059_v59  ;;  %v872_v2 = vmul.f32 0.5, %v538_v61  ;;  %v540_v3 = vpop.f32.mrb[63].mxu0 }
 0x198   : > { %v1881_v1 = vpop.eup %1880  ;;  %1260 = vst [vmem:[%s2348_s18 + $0x288] sm:$0xff] %v1157_v60  ;;  %v1061_v4 = vmul.f32 0.5, %v1879_v62  ;;  %v873_v5 = vmul.f32 0.5, %v540_v3 }
 0x199   : > { %1261 = vst [vmem:[%s2348_s18 + $0x290] sm:$0xff] %v1158_v63  ;;  %v1062_v6 = vmul.f32 0.5, %v1881_v1  ;;  %1890 = vtanh.f32 %v872_v2 }
 0x19a   : > { %v1160_v7 = vadd.f32 0.5, %v1061_v4  ;;  %1892 = vtanh.f32 %v873_v5  ;;  %v544_v8 = vpop.f32.mrb[64].mxu0 }
 0x19b   : > { %v1883_v9 = vpop.eup %1882  ;;  %v1161_v10 = vadd.f32 0.5, %v1062_v6  ;;  %v875_v11 = vmul.f32 0.5, %v544_v8  ;;  %v546_v12 = vpop.f32.mrb[65].mxu0 }
 0x19c   : > { %v1885_v13 = vpop.eup %1884  ;;  %1263 = vst [vmem:[%s2348_s18 + $0x2a0] sm:$0xff] %v1160_v7  ;;  %v1064_v14 = vmul.f32 0.5, %v1883_v9  ;;  %v876_v15 = vmul.f32 0.5, %v546_v12 }
 0x19d   : > { %1264 = vst [vmem:[%s2348_s18 + $0x2a8] sm:$0xff] %v1161_v10  ;;  %v1065_v16 = vmul.f32 0.5, %v1885_v13  ;;  %1894 = vtanh.f32 %v875_v11 }
 0x19e   : > { %v1163_v17 = vadd.f32 0.5, %v1064_v14  ;;  %1896 = vtanh.f32 %v876_v15 }
 0x19f   : > { %v1887_v18 = vpop.eup %1886  ;;  %v1164_v19 = vadd.f32 0.5, %v1065_v16 }
 0x1a0   : > { %v1889_v20 = vpop.eup %1888  ;;  %1266 = vst [vmem:[%s2348_s18 + $0x2b8] sm:$0xff] %v1163_v17  ;;  %v1067_v0 = vmul.f32 0.5, %v1887_v18 }
 0x1a1   : > { %1267 = vst [vmem:[%s2348_s18 + $0x2c0] sm:$0xff] %v1164_v19  ;;  %v1068_v21 = vmul.f32 0.5, %v1889_v20 }
 0x1a2   : > { %v1166_v22 = vadd.f32 0.5, %v1067_v0 }
 0x1a3   : > { %v1891_v23 = vpop.eup %1890  ;;  %v1167_v24 = vadd.f32 0.5, %v1068_v21 }
 0x1a4   : > { %v1893_v25 = vpop.eup %1892  ;;  %1269 = vst [vmem:[%s2348_s18 + $0x2d0] sm:$0xff] %v1166_v22  ;;  %v1070_v26 = vmul.f32 0.5, %v1891_v23 }
 0x1a5   : > { %1270 = vst [vmem:[%s2348_s18 + $0x2d8] sm:$0xff] %v1167_v24  ;;  %v1071_v27 = vmul.f32 0.5, %v1893_v25 }
 0x1a6   : > { %v1169_v28 = vadd.f32 0.5, %v1070_v26 }
 0x1a7   : > { %v1895_v29 = vpop.eup %1894  ;;  %v1170_v30 = vadd.f32 0.5, %v1071_v27  ;;  %16 = sbr.rel (!%p14_p0) target bundleno = 1 (0x1), region = 38 }
 0x1a8   : > { %v1897_v31 = vpop.eup %1896  ;;  %1272 = vst [vmem:[%s2348_s18 + $0x2e8] sm:$0xff] %v1169_v28  ;;  %v1073_v32 = vmul.f32 0.5, %v1895_v29 }
 0x1a9   : > { %1273 = vst [vmem:[%s2348_s18 + $0x2f0] sm:$0xff] %v1170_v30  ;;  %v1074_v33 = vmul.f32 0.5, %v1897_v31 }
 0x1aa   : > { %v1172_v34 = vadd.f32 0.5, %v1073_v32 }
 0x1ab   : > { %v1173_v35 = vadd.f32 0.5, %v1074_v33 }
 0x1ac   : > { %1275 = vst [vmem:[%s2348_s18 + $0x300] sm:$0xff] %v1172_v34 }
 0x1ad   : > { %1276 = vst [vmem:[%s2348_s18 + $0x308] sm:$0xff] %v1173_v35 }
 0x1ae   :  { %1909 = shalt.err (!%p1906_p5)
}
 0x1af   :  { %s1910_s24 = scalar_lea.hbm %s2499_s2, 25344 }
 0x1b0   :  { %p1911_p6 = scmp.ne.s32.totalorder %s2499_s2, %s1910_s24  ;;  %p1914_p7 = scmp.lt.u32.totalorder %s1910_s24, %s2499_s2 }
 0x1b2   :  { %p1916_p8 = pnand %p1914_p7, %p1911_p6 }
 0x1b4   :  { %1919 = shalt.err (!%p1916_p8)
}
 0x1b5   :  { %s1933_s0 = smov 384   ;;  %s1934_s1 = smov 24  }
 0x1b6   :  { %1289 = dma.vmem_to_hbm [thread:$0]  %s1284_s20, 25344, %s2499_s2, [#allocation3], %s1933_s0, %s1933_s0, %s1934_s1  }
 0x1b7   :  { %1924 = dma.done.wait [#allocation3], 25344  }
 0x1b8   :  { %1925 = vsyncadd [#allocation3], 4294941952 }
 0x1b9   :  { %1293 = vsyncpa [#allocation3], 1 }

</bundles_post_ra>
